<compile_context>
chip_gen: v7x
topology: tpu7x:2x2x1
jax: 0.10.0
libtpu: 0.0.40
codegen_flags: <defaults>
</compile_context>

<pallas_src>
import jax
import jax.numpy as jnp
from jax.experimental import pallas as pl
from jax.experimental.pallas import tpu as pltpu

# ---------------- model configuration (mirrors DistTrainModel.__init__) ----------------------
LN_BOT = (16, 32, 8)          # bottom MLP: 16 -> 32 -> 8   (sigmoid_bot = -1 -> all ReLU)
EMB_SIZE = LN_BOT[-1]         # 'dot' interaction requires emb_size == bottom-MLP out dim
NUM_TABLES = 3
NUM_ROWS = 32                 # rows per synthetic embedding table
NUM_FEATS = 1 + NUM_TABLES    # dense feature + embeddings
# interact_itself=False -> strictly-lower-triangle pairs (i > j), same order as torch's li/lj
PAIRS = tuple((i, j) for i in range(NUM_FEATS) for j in range(i))
NUM_PAIRS = len(PAIRS)        # 6
LN_TOP = (EMB_SIZE + NUM_PAIRS, 32, 16, 1)   # 14 -> 32 -> 16 -> 1, Sigmoid on last layer

TILE_B = 1024                 # batch rows per grid step (grid stays a multiple of 2 for v7x)
PARAM_LANES = 128             # lane width of the packed parameter slab

# TODO(synk): rpc.rpc_async prefetch (fetch_embs/get_embedding), the nn.ParameterDict prefetch
# cache and the host-side queues are distributed host plumbing with no on-device equivalent;
# the embedding lookup itself (apply_emb) is reproduced in-kernel from local tables.


# ---------------- Pallas kernel ---------------------------------------------------------------
def make_dlrm_kernel(offs):
    """offs: {name: (row_offset, n_rows, n_cols)} static layout of the packed parameter slab."""

    def kernel(xT_ref, idx_ref, tgtT_ref, slab_ref, out_ref):
        tb = xT_ref.shape[-1]

        def P(name):                          # static slice into the resident parameter slab
            r0, nr, nc = offs[name]
            return slab_ref[r0:r0 + nr, 0:nc]

        xT = xT_ref[...]                      # (16, TB): batch on lanes, features on sublanes

        # ---- bottom MLP (Linear+ReLU, Linear+ReLU); weights kept in PyTorch (out, in) layout
        h = jnp.maximum(jnp.dot(P("Wb0"), xT, preferred_element_type=jnp.float32) + P("bb0"), 0.0)
        xb = jnp.maximum(jnp.dot(P("Wb1"), h, preferred_element_type=jnp.float32) + P("bb1"), 0.0)

        # ---- apply_emb: ALL tables in one block-diagonal one-hot matmul on the MXU
        rows = jax.lax.broadcasted_iota(jnp.int32, (NUM_ROWS, tb), 0)          # built once per tile
        onehot = jnp.concatenate(
            [(rows == idx_ref[t:t + 1, :]).astype(jnp.float32)
             for t in range(NUM_TABLES)], axis=0)                               # (96, TB)
        emb = jnp.dot(P("TAB"), onehot, preferred_element_type=jnp.float32)      # (24, TB)

        feats = [xb] + [emb[t * EMB_SIZE:(t + 1) * EMB_SIZE, :]
                        for t in range(NUM_TABLES)]                              # 4 x (8, TB)

        # ---- 'dot' interaction folded into a SINGLE first-top-layer matmul.
        # cat stacks xb and the 6 pairwise element-products along sublanes (8-row aligned);
        # Wt0c = [Wt0x | repeat(Wt0z, EMB)] turns the per-pair reduction into MXU work.
        cat = jnp.concatenate([xb] + [feats[i] * feats[j] for (i, j) in PAIRS], axis=0)   # (56, TB)
        t0 = jnp.maximum(jnp.dot(P("Wt0c"), cat, preferred_element_type=jnp.float32)
                         + P("bt0"), 0.0)                                         # (32, TB)
        t1 = jnp.maximum(jnp.dot(P("Wt1"), t0, preferred_element_type=jnp.float32)
                         + P("bt1"), 0.0)                                         # (16, TB)
        z = jnp.dot(P("Wt2"), t1, preferred_element_type=jnp.float32) + P("bt2")  # (1, TB) logits

        # ---- sigmoid + BCELoss fused through softplus / log-sigmoid (PyTorch clamps log at -100)
        sp_z = jnp.maximum(z, 0.0) + jnp.log(1.0 + jnp.exp(-jnp.abs(z)))          # softplus(z)
        p = jnp.exp(z - sp_z)                                                     # sigmoid(z)
        log_p = jnp.maximum(z - sp_z, -100.0)                                     # log(sigmoid(z))
        log_1mp = jnp.maximum(-sp_z, -100.0)                                      # log(1-sigmoid(z))
        tgt = tgtT_ref[...]                                                       # (1, TB)
        bce = -(tgt * log_p + (1.0 - tgt) * log_1mp)                              # (1, TB)

        out_ref[...] = jnp.concatenate([p, bce], axis=0)    # one lane-dense (2, TB) store per tile

    return kernel


def dist_train_forward(xT, lS_i, tgtT, slab, offs, tile_b=TILE_B):
    b_total = xT.shape[1]
    assert b_total % tile_b == 0, "batch must be a multiple of the tile size"
    num_tiles = b_total // tile_b

    in_specs = [
        pl.BlockSpec((LN_BOT[0], tile_b), lambda i: (0, i)),       # dense features (batch-tiled)
        pl.BlockSpec((NUM_TABLES, tile_b), lambda i: (0, i)),      # lookup indices (batch-tiled)
        pl.BlockSpec((1, tile_b), lambda i: (0, i)),               # targets (batch-tiled)
        pl.BlockSpec(slab.shape, lambda i: (0, 0)),                # packed params + tables (resident)
    ]
    out_specs = pl.BlockSpec((2, tile_b), lambda i: (0, i))        # row 0 = p, row 1 = per-sample BCE
    out_shape = jax.ShapeDtypeStruct((2, b_total), jnp.float32)

    out = pl.pallas_call(
        make_dlrm_kernel(offs),
        out_shape=out_shape,
        grid_spec=pl.GridSpec(grid=(num_tiles,), in_specs=in_specs, out_specs=out_specs),
        compiler_params=pltpu.CompilerParams(
            dimension_semantics=("parallel",)),      # v7x: shard batch tiles across both TCs
    )(xT, lS_i, tgtT, slab)

    p = out[0]                                       # (B,) probabilities
    loss = jnp.mean(out[1])                          # exact mean: B % tile_b == 0 (asserted)
    return loss, p


# ---------------- deterministic parameter / input construction -------------------------------
def make_mlp_params(key, ln):
    """Mirrors create_mlp: W (m, n) ~ N(0, sqrt(2/(m+n))), b (m,) ~ N(0, sqrt(1/m))."""
    params = []
    for i in range(len(ln) - 1):
        n, m = ln[i], ln[i + 1]
        key, kw, kb = jax.random.split(key, 3)
        params.append(jax.random.normal(kw, (m, n), jnp.float32) * jnp.sqrt(2.0 / (m + n)))
        params.append(jax.random.normal(kb, (m,), jnp.float32) * jnp.sqrt(1.0 / m))
    return key, params


def build_param_slab(bot_params, top_params, tables):
    """Pack every weight/bias AND the block-diag table slab into one lane-padded f32 slab."""
    Wb0, bb0, Wb1, bb1 = bot_params
    Wt0, bt0, Wt1, bt1, Wt2, bt2 = top_params
    # Fused first top layer: Wt0c = [Wt0[:, :EMB] | repeat(Wt0[:, EMB:], EMB, axis=1)].
    # repeat order (pair-major, d-minor) matches the in-kernel concat over PAIRS.
    Wt0c = jnp.concatenate([Wt0[:, :EMB_SIZE],
                            jnp.repeat(Wt0[:, EMB_SIZE:], EMB_SIZE, axis=1)], axis=1)   # (32, 56)
    # Block-diagonal (transposed) table slab: all 3 lookups become one one-hot matmul.
    tab = jnp.zeros((NUM_TABLES * EMB_SIZE, NUM_TABLES * NUM_ROWS), jnp.float32)
    for t in range(NUM_TABLES):
        tab = tab.at[t * EMB_SIZE:(t + 1) * EMB_SIZE,
                     t * NUM_ROWS:(t + 1) * NUM_ROWS].set(tables[t].T)

    mats = [("Wb0", Wb0), ("bb0", bb0[:, None]),
            ("Wb1", Wb1), ("bb1", bb1[:, None]),
            ("TAB", tab),
            ("Wt0c", Wt0c), ("bt0", bt0[:, None]),
            ("Wt1", Wt1), ("bt1", bt1[:, None]),
            ("Wt2", Wt2), ("bt2", bt2[:, None])]
    offs, blocks, row = {}, [], 0
    for name, a in mats:
        r, c = a.shape
        offs[name] = (row, r, c)
        pad_r = (-r) % 8                              # keep every slice 8-sublane aligned
        blocks.append(jnp.pad(a, ((0, pad_r), (0, PARAM_LANES - c))))
        row += r + pad_r
    return jnp.concatenate(blocks, axis=0), offs


def reference_forward(dense_x, lS_i, target, tables, bot_params, top_params):
    """Pure-JAX reference matching the PyTorch forward (sigmoid + BCELoss with -100 log clamp)."""
    Wb0, bb0, Wb1, bb1 = bot_params
    Wt0, bt0, Wt1, bt1, Wt2, bt2 = top_params
    x = jnp.maximum(dense_x @ Wb0.T + bb0, 0.0)
    x = jnp.maximum(x @ Wb1.T + bb1, 0.0)
    ly = [jnp.take(tables[t], lS_i[t], axis=0) for t in range(NUM_TABLES)]
    T = jnp.stack([x] + ly, axis=1)                                  # (B, NUM_FEATS, EMB)
    Z = jnp.einsum('bnd,bmd->bnm', T, T)
    zflat = jnp.stack([Z[:, i, j] for (i, j) in PAIRS], axis=1)
    r = jnp.concatenate([x, zflat], axis=1)
    t0 = jnp.maximum(r @ Wt0.T + bt0, 0.0)
    t1 = jnp.maximum(t0 @ Wt1.T + bt1, 0.0)
    p = jax.nn.sigmoid(t1 @ Wt2.T + bt2)
    bce = -(target * jnp.maximum(jnp.log(p), -100.0)
            + (1.0 - target) * jnp.maximum(jnp.log(1.0 - p), -100.0))
    return jnp.mean(bce), p


if __name__ == "__main__":
    B_TOTAL = 2048                                   # 2 batch tiles of TILE_B = 1024

    key = jax.random.PRNGKey(0)
    key, bot_params = make_mlp_params(key, LN_BOT)
    key, top_params = make_mlp_params(key, LN_TOP)

    key, k_dense, k_tab, k_idx, k_tgt = jax.random.split(key, 5)
    # Dense features generated directly in (features, batch) layout: no host-side transpose op.
    xT = jax.random.normal(k_dense, (LN_BOT[0], B_TOTAL), jnp.float32)
    # Synthetic embedding tables + lookup indices (stand-in for the RPC prefetch cache).
    tables = jax.random.normal(k_tab, (NUM_TABLES, NUM_ROWS, EMB_SIZE), jnp.float32) * 0.1
    lS_i = jax.random.randint(k_idx, (NUM_TABLES, B_TOTAL), 0, NUM_ROWS, dtype=jnp.int32)
    tgtT = jax.random.uniform(k_tgt, (1, B_TOTAL), jnp.float32)

    slab, offs = build_param_slab(bot_params, top_params, tables)

    loss, p = dist_train_forward(xT, lS_i, tgtT, slab, offs)
    loss = jax.block_until_ready(loss)
    p = jax.block_until_ready(p)

    ref_loss, ref_p = reference_forward(xT.T, lS_i, tgtT.reshape(B_TOTAL, 1), tables,
                                        bot_params, top_params)
    assert jnp.allclose(loss, ref_loss, atol=1e-4, rtol=1e-4), (float(loss), float(ref_loss))
    assert jnp.allclose(p.reshape(B_TOTAL, 1), ref_p, atol=1e-4, rtol=1e-4)

    print("KERNEL_OK")
</pallas_src>

<mosaic_0001>
module attributes {stable_mosaic.version = 11 : i64} {
  func.func @kernel(%arg0: i32, %arg1: memref<16x1024xf32, #tpu.memory_space<vmem>>, %arg2: memref<3x1024xi32, #tpu.memory_space<vmem>>, %arg3: memref<1x1024xf32, #tpu.memory_space<vmem>>, %arg4: memref<216x128xf32, #tpu.memory_space<vmem>>, %arg5: memref<2x1024xf32, #tpu.memory_space<vmem>>) attributes {dimension_semantics = [#tpu.dimension_semantics<parallel>], iteration_bounds = array<i64: 2>, scalar_prefetch = 0 : i64, scratch_operands = 0 : i64, tpu.core_type = #tpu.core_type<tc>, window_params = [{transform_indices = @transform_0, window_bounds = array<i64: 16, 1024>}, {transform_indices = @transform_1, window_bounds = array<i64: 3, 1024>}, {transform_indices = @transform_2, window_bounds = array<i64: 1, 1024>}, {pipeline_mode = #tpu.pipeline_mode<synchronous>, transform_indices = @transform_3, window_bounds = array<i64: 216, 128>}, {transform_indices = @transform_4, window_bounds = array<i64: 2, 1024>}]} {
    %c0 = arith.constant 0 : index
    %c0_0 = arith.constant 0 : index
    %0 = vector.load %arg1[%c0, %c0_0] : memref<16x1024xf32, #tpu.memory_space<vmem>>, vector<16x1024xf32>
    %c0_1 = arith.constant 0 : index
    %c0_2 = arith.constant 0 : index
    %1 = vector.load %arg4[%c0_1, %c0_2] : memref<216x128xf32, #tpu.memory_space<vmem>>, vector<32x16xf32>
    %cst = arith.constant dense<0.000000e+00> : vector<32x1024xf32>
    %2 = tpu.matmul %1, %0, %cst {dimension_numbers = #tpu.dot_dimension_numbers<[1], [0], [0], [1], [0, 0, 1, 1], [], []>} : vector<32x16xf32>, vector<16x1024xf32>, vector<32x1024xf32> -> vector<32x1024xf32>
    %c32 = arith.constant 32 : index
    %c0_3 = arith.constant 0 : index
    %3 = vector.load %arg4[%c32, %c0_3] : memref<216x128xf32, #tpu.memory_space<vmem>>, vector<32x1xf32>
    %4 = vector.broadcast %3 : vector<32x1xf32> to vector<32x1024xf32>
    %5 = arith.addf %2, %4 : vector<32x1024xf32>
    %cst_4 = arith.constant 0.000000e+00 : f32
    %6 = vector.broadcast %cst_4 : f32 to vector<32x1024xf32>
    %7 = arith.maximumf %5, %6 : vector<32x1024xf32>
    %c64 = arith.constant 64 : index
    %c0_5 = arith.constant 0 : index
    %8 = vector.load %arg4[%c64, %c0_5] : memref<216x128xf32, #tpu.memory_space<vmem>>, vector<8x32xf32>
    %cst_6 = arith.constant dense<0.000000e+00> : vector<8x1024xf32>
    %9 = tpu.matmul %8, %7, %cst_6 {dimension_numbers = #tpu.dot_dimension_numbers<[1], [0], [0], [1], [0, 0, 1, 1], [], []>} : vector<8x32xf32>, vector<32x1024xf32>, vector<8x1024xf32> -> vector<8x1024xf32>
    %c72 = arith.constant 72 : index
    %c0_7 = arith.constant 0 : index
    %10 = vector.load %arg4[%c72, %c0_7] : memref<216x128xf32, #tpu.memory_space<vmem>>, vector<8x1xf32>
    %11 = vector.broadcast %10 : vector<8x1xf32> to vector<8x1024xf32>
    %12 = arith.addf %9, %11 : vector<8x1024xf32>
    %cst_8 = arith.constant 0.000000e+00 : f32
    %13 = vector.broadcast %cst_8 : f32 to vector<8x1024xf32>
    %14 = arith.maximumf %12, %13 : vector<8x1024xf32>
    %15 = tpu.iota {dimensions = array<i32: 0>} : vector<32x1024xi32>
    %c0_9 = arith.constant 0 : index
    %c0_10 = arith.constant 0 : index
    %16 = vector.load %arg2[%c0_9, %c0_10] : memref<3x1024xi32, #tpu.memory_space<vmem>>, vector<1x1024xi32>
    %17 = vector.broadcast %16 : vector<1x1024xi32> to vector<32x1024xi32>
    %18 = arith.cmpi eq, %15, %17 : vector<32x1024xi32>
    %19 = arith.extui %18 : vector<32x1024xi1> to vector<32x1024xi32>
    %20 = arith.sitofp %19 : vector<32x1024xi32> to vector<32x1024xf32>
    %c1 = arith.constant 1 : index
    %c0_11 = arith.constant 0 : index
    %21 = vector.load %arg2[%c1, %c0_11] : memref<3x1024xi32, #tpu.memory_space<vmem>>, vector<1x1024xi32>
    %22 = vector.broadcast %21 : vector<1x1024xi32> to vector<32x1024xi32>
    %23 = arith.cmpi eq, %15, %22 : vector<32x1024xi32>
    %24 = arith.extui %23 : vector<32x1024xi1> to vector<32x1024xi32>
    %25 = arith.sitofp %24 : vector<32x1024xi32> to vector<32x1024xf32>
    %c2 = arith.constant 2 : index
    %c0_12 = arith.constant 0 : index
    %26 = vector.load %arg2[%c2, %c0_12] : memref<3x1024xi32, #tpu.memory_space<vmem>>, vector<1x1024xi32>
    %27 = vector.broadcast %26 : vector<1x1024xi32> to vector<32x1024xi32>
    %28 = arith.cmpi eq, %15, %27 : vector<32x1024xi32>
    %29 = arith.extui %28 : vector<32x1024xi1> to vector<32x1024xi32>
    %30 = arith.sitofp %29 : vector<32x1024xi32> to vector<32x1024xf32>
    %31 = tpu.concatenate %20, %25, %30 in 0 : vector<32x1024xf32>, vector<32x1024xf32>, vector<32x1024xf32> -> vector<96x1024xf32>
    %c80 = arith.constant 80 : index
    %c0_13 = arith.constant 0 : index
    %32 = vector.load %arg4[%c80, %c0_13] : memref<216x128xf32, #tpu.memory_space<vmem>>, vector<24x96xf32>
    %cst_14 = arith.constant dense<0.000000e+00> : vector<24x1024xf32>
    %33 = tpu.matmul %32, %31, %cst_14 {dimension_numbers = #tpu.dot_dimension_numbers<[1], [0], [0], [1], [0, 0, 1, 1], [], []>} : vector<24x96xf32>, vector<96x1024xf32>, vector<24x1024xf32> -> vector<24x1024xf32>
    %34 = vector.extract_strided_slice %33 {offsets = [0, 0], sizes = [8, 1024], strides = [1, 1]} : vector<24x1024xf32> to vector<8x1024xf32>
    %35 = vector.extract_strided_slice %33 {offsets = [8, 0], sizes = [8, 1024], strides = [1, 1]} : vector<24x1024xf32> to vector<8x1024xf32>
    %36 = vector.extract_strided_slice %33 {offsets = [16, 0], sizes = [8, 1024], strides = [1, 1]} : vector<24x1024xf32> to vector<8x1024xf32>
    %37 = arith.mulf %34, %14 : vector<8x1024xf32>
    %38 = arith.mulf %35, %14 : vector<8x1024xf32>
    %39 = arith.mulf %35, %34 : vector<8x1024xf32>
    %40 = arith.mulf %36, %14 : vector<8x1024xf32>
    %41 = arith.mulf %36, %34 : vector<8x1024xf32>
    %42 = arith.mulf %36, %35 : vector<8x1024xf32>
    %43 = tpu.concatenate %14, %37, %38, %39, %40, %41, %42 in 0 : vector<8x1024xf32>, vector<8x1024xf32>, vector<8x1024xf32>, vector<8x1024xf32>, vector<8x1024xf32>, vector<8x1024xf32>, vector<8x1024xf32> -> vector<56x1024xf32>
    %c104 = arith.constant 104 : index
    %c0_15 = arith.constant 0 : index
    %44 = vector.load %arg4[%c104, %c0_15] : memref<216x128xf32, #tpu.memory_space<vmem>>, vector<32x56xf32>
    %cst_16 = arith.constant dense<0.000000e+00> : vector<32x1024xf32>
    %45 = tpu.matmul %44, %43, %cst_16 {dimension_numbers = #tpu.dot_dimension_numbers<[1], [0], [0], [1], [0, 0, 1, 1], [], []>} : vector<32x56xf32>, vector<56x1024xf32>, vector<32x1024xf32> -> vector<32x1024xf32>
    %c136 = arith.constant 136 : index
    %c0_17 = arith.constant 0 : index
    %46 = vector.load %arg4[%c136, %c0_17] : memref<216x128xf32, #tpu.memory_space<vmem>>, vector<32x1xf32>
    %47 = vector.broadcast %46 : vector<32x1xf32> to vector<32x1024xf32>
    %48 = arith.addf %45, %47 : vector<32x1024xf32>
    %cst_18 = arith.constant 0.000000e+00 : f32
    %49 = vector.broadcast %cst_18 : f32 to vector<32x1024xf32>
    %50 = arith.maximumf %48, %49 : vector<32x1024xf32>
    %c168 = arith.constant 168 : index
    %c0_19 = arith.constant 0 : index
    %51 = vector.load %arg4[%c168, %c0_19] : memref<216x128xf32, #tpu.memory_space<vmem>>, vector<16x32xf32>
    %cst_20 = arith.constant dense<0.000000e+00> : vector<16x1024xf32>
    %52 = tpu.matmul %51, %50, %cst_20 {dimension_numbers = #tpu.dot_dimension_numbers<[1], [0], [0], [1], [0, 0, 1, 1], [], []>} : vector<16x32xf32>, vector<32x1024xf32>, vector<16x1024xf32> -> vector<16x1024xf32>
    %c184 = arith.constant 184 : index
    %c0_21 = arith.constant 0 : index
    %53 = vector.load %arg4[%c184, %c0_21] : memref<216x128xf32, #tpu.memory_space<vmem>>, vector<16x1xf32>
    %54 = vector.broadcast %53 : vector<16x1xf32> to vector<16x1024xf32>
    %55 = arith.addf %52, %54 : vector<16x1024xf32>
    %cst_22 = arith.constant 0.000000e+00 : f32
    %56 = vector.broadcast %cst_22 : f32 to vector<16x1024xf32>
    %57 = arith.maximumf %55, %56 : vector<16x1024xf32>
    %c200 = arith.constant 200 : index
    %c0_23 = arith.constant 0 : index
    %58 = vector.load %arg4[%c200, %c0_23] : memref<216x128xf32, #tpu.memory_space<vmem>>, vector<1x16xf32>
    %cst_24 = arith.constant dense<0.000000e+00> : vector<1x1024xf32>
    %59 = tpu.matmul %58, %57, %cst_24 {dimension_numbers = #tpu.dot_dimension_numbers<[1], [0], [0], [1], [0, 0, 1, 1], [], []>} : vector<1x16xf32>, vector<16x1024xf32>, vector<1x1024xf32> -> vector<1x1024xf32>
    %c208 = arith.constant 208 : index
    %c0_25 = arith.constant 0 : index
    %60 = vector.load %arg4[%c208, %c0_25] : memref<216x128xf32, #tpu.memory_space<vmem>>, vector<1x1xf32>
    %61 = vector.broadcast %60 : vector<1x1xf32> to vector<1x1024xf32>
    %62 = arith.addf %59, %61 : vector<1x1024xf32>
    %cst_26 = arith.constant 0.000000e+00 : f32
    %63 = vector.broadcast %cst_26 : f32 to vector<1x1024xf32>
    %64 = arith.maximumf %62, %63 : vector<1x1024xf32>
    %65 = math.absf %62 : vector<1x1024xf32>
    %cst_27 = arith.constant 0.000000e+00 : f32
    %66 = vector.broadcast %cst_27 : f32 to vector<1x1024xf32>
    %67 = arith.subf %66, %65 : vector<1x1024xf32>
    %68 = math.exp %67 : vector<1x1024xf32>
    %cst_28 = arith.constant 1.000000e+00 : f32
    %69 = vector.broadcast %cst_28 : f32 to vector<1x1024xf32>
    %70 = arith.addf %69, %68 : vector<1x1024xf32>
    %71 = math.log %70 : vector<1x1024xf32>
    %72 = arith.addf %64, %71 : vector<1x1024xf32>
    %73 = arith.subf %62, %72 : vector<1x1024xf32>
    %74 = math.exp %73 : vector<1x1024xf32>
    %75 = arith.subf %62, %72 : vector<1x1024xf32>
    %cst_29 = arith.constant -1.000000e+02 : f32
    %76 = vector.broadcast %cst_29 : f32 to vector<1x1024xf32>
    %77 = arith.maximumf %75, %76 : vector<1x1024xf32>
    %cst_30 = arith.constant 0.000000e+00 : f32
    %78 = vector.broadcast %cst_30 : f32 to vector<1x1024xf32>
    %79 = arith.subf %78, %72 : vector<1x1024xf32>
    %cst_31 = arith.constant -1.000000e+02 : f32
    %80 = vector.broadcast %cst_31 : f32 to vector<1x1024xf32>
    %81 = arith.maximumf %79, %80 : vector<1x1024xf32>
    %c0_32 = arith.constant 0 : index
    %c0_33 = arith.constant 0 : index
    %82 = vector.load %arg3[%c0_32, %c0_33] : memref<1x1024xf32, #tpu.memory_space<vmem>>, vector<1x1024xf32>
    %83 = arith.mulf %82, %77 : vector<1x1024xf32>
    %cst_34 = arith.constant 1.000000e+00 : f32
    %84 = vector.broadcast %cst_34 : f32 to vector<1x1024xf32>
    %85 = arith.subf %84, %82 : vector<1x1024xf32>
    %86 = arith.mulf %85, %81 : vector<1x1024xf32>
    %87 = arith.addf %83, %86 : vector<1x1024xf32>
    %cst_35 = arith.constant 0.000000e+00 : f32
    %88 = vector.broadcast %cst_35 : f32 to vector<1x1024xf32>
    %89 = arith.subf %88, %87 : vector<1x1024xf32>
    %90 = tpu.concatenate %74, %89 in 0 : vector<1x1024xf32>, vector<1x1024xf32> -> vector<2x1024xf32>
    %c0_36 = arith.constant 0 : index
    %c0_37 = arith.constant 0 : index
    %91 = vector.load %arg5[%c0_36, %c0_37] : memref<2x1024xf32, #tpu.memory_space<vmem>>, vector<2x1024xf32>
    tpu.vector_store %arg5[%c0_36, %c0_37], %90 {strides = array<i32>} : memref<2x1024xf32, #tpu.memory_space<vmem>>, vector<2x1024xf32>,
    return
  }
  func.func @transform_0(%arg0: i32) -> (i32, i32) {
    %c0_i32 = arith.constant 0 : i32
    %c0_i32_0 = arith.constant 0 : i32
    return %c0_i32, %arg0 : i32, i32
  }
  func.func @transform_1(%arg0: i32) -> (i32, i32) {
    %c0_i32 = arith.constant 0 : i32
    %c0_i32_0 = arith.constant 0 : i32
    return %c0_i32, %arg0 : i32, i32
  }
  func.func @transform_2(%arg0: i32) -> (i32, i32) {
    %c0_i32 = arith.constant 0 : i32
    %c0_i32_0 = arith.constant 0 : i32
    return %c0_i32, %arg0 : i32, i32
  }
  func.func @transform_3(%arg0: i32) -> (i32, i32) {
    %c0_i32 = arith.constant 0 : i32
    %c0_i32_0 = arith.constant 0 : i32
    %c0_i32_1 = arith.constant 0 : i32
    return %c0_i32, %c0_i32_0 : i32, i32
  }
  func.func @transform_4(%arg0: i32) -> (i32, i32) {
    %c0_i32 = arith.constant 0 : i32
    %c0_i32_0 = arith.constant 0 : i32
    return %c0_i32, %arg0 : i32, i32
  }
}

</mosaic_0001>

<bundles_post_ra>
// kernel: tpu_custom_call.1
= control target key start
LH: loop header
LB: loop body
LE: loop exit
PB: predicated region body
PF: predicated region fallthrough
CT: control target
= control target key end

     0   :  { %s5448_s0 = inlined_call_operand.hbm [shape: f32[16,2048], index: 0, kind: input, shape index: {}]   ;;  %s5449_s1 = inlined_call_operand.hbm [shape: s32[3,2048], index: 1, kind: input, shape index: {}]   ;;  %s5450_s2 = inlined_call_operand.hbm [shape: f32[1,2048], index: 2, kind: input, shape index: {}]   ;;  %s5451_s3 = inlined_call_operand.hbm [shape: f32[216,128], index: 3, kind: input, shape index: {}]   ;;  %s5452_s4 = inlined_call_operand.hbm [shape: f32[2,2048], index: 4, kind: output, shape index: {}]  }
   0x1   :  { %5469 = sst [smem:[#allocation19_spill]] %s5449_s1 }
   0x2   :  { %9 = vsyncpa [#allocation3], 0 }
   0x3   :  { %11 = vsyncpa [#allocation3 + $0x1], 0 }
   0x4   :  { %12 = vsyncpa [#allocation6], 0 }
   0x5   :  { %14 = vsyncpa [#allocation6 + $0x1], 0 }
   0x6   :  { %15 = vsyncpa [#allocation9], 0 }
   0x7   :  { %16 = vsyncpa [#allocation4], 0 }
   0x8   :  { %18 = vsyncpa [#allocation4 + $0x1], 0  ;;  %s4269_s15 = smov 0   ;;  %s4271_s16 = smov 0  }
   0x9   :  { %s4273_s17 = smov 0   ;;  %s4275_s18 = smov 0  }
   0xa LB: > { %5470 = sst [smem:[#allocation15_spill]] %s4223_s17  ;;  %s4290_s19 = sadd.s32 1, %s4227_s18   ;;  %s4227_s18 = sphi %s4275_s18, %s5569_s18   ;;  %s4223_s17 = sphi %s4273_s17, %s5571_s17   ;;  %s4219_s16 = sphi %s4271_s16, %s5573_s16   ;;  %s4215_s15 = sphi %s4269_s15, %s5572_s15  }
   0xb   : > { %5471 = sst [smem:[#allocation16_spill]] %s4290_s19  ;;  %s31_s20 = sadd.s32 1, %s4223_s17 }
   0xc   : > { %s28_s21 = ssub.s32 %s4227_s18, %s4290_s19  ;;  %p5453_p0 = scmp.ne.s32.totalorder %s4223_s17, %s4219_s16 }
   0xd   : > { %p29_p1 = scmp.eq.s32.totalorder %s28_s21, 0  ;;  %p39_p2 = scmp.eq.s32.totalorder %s4227_s18, 0 }
   0xe   : > { %p3939_p4 = scmp.lt.s32.totalorder %s4227_s18, 2  ;;  %s4307_s23 = sand.u32 1, %s4223_s17  }
   0xf   : > { %s4301_s22 = scalar_select %p29_p1, %s4223_s17, %s31_s20  }
  0x10   : > { %p40_p5 = por %p39_p2, %p5453_p0  ;;  %s3390_s24 = sshll.u32 %s4307_s23, 7 }
  0x11   : > { %5472 = sst [smem:[#allocation17_spill]] %s4301_s22  ;;  %s201_s25 = sand.u32 1, %s4227_s18  }
  0x12   : > { %p4311_p6 = pnand %p3939_p4, %p40_p5  ;;  %s3393_s27 = sshll.u32 %s4307_s23, 5 }
  0x13   : > { %s3665_s28 = sshll.u32 %s4227_s18, 9  ;;  %s5474_s1 = sld [smem:[#allocation19_spill]] }
  0x14   : > { %s5473_s26 = scalar_select %p4311_p6, 1, 0 }
  0x15   : > { %s205_s6 = scalar_lea.vmem [#allocation5], %s3393_s27  ;;  %s4324_s8 = scalar_lea.sflag [#allocation6], %s201_s25 }
  0x16   : > { %s213_s7 = sshll.u32 %s205_s6, 4  ;;  %p4330_p8 = pneg %p4311_p6  ;;  %s4322_s7 = int_to_ptr.vmem [resolvable:$true] %s213_s7 }
  0x18   : > { %s5475_s10 = scalar_select %p4330_p8, 1, 0 }
  0x19   : > { %s4320_s5 = scalar_lea.hbm %s5474_s1, %s3665_s28  ;;  %s4040_s13 = scalar_lea.hbm %s5474_s1, 1024 }
  0x1a   : > { %s4035_s9 = scalar_lea.hbm %s4320_s5, 512  ;;  %p4041_p11 = scmp.lt.u32.totalorder %s4320_s5, %s5474_s1 }
  0x1b   : > { %p4036_p7 = scmp.ne.s32.totalorder %s4320_s5, %s4035_s9  ;;  %p4042_p12 = scmp.lt.u32.totalorder %s4040_s13, %s4035_s9 }
  0x1c   : > { %p4044_p1 = scmp.lt.u32.totalorder %s4035_s9, %s4320_s5 }
  0x1d   : > { %p4038_p9 = pnand %p4330_p8, %p4036_p7  ;;  %p4043_p13 = por %p4042_p12, %p4041_p11 }
  0x1f   : > { %p4039_p10 = pneg %p4038_p9  ;;  %p4045_p2 = por %p4044_p1, %p4043_p13 }
  0x21   : > { %p4046_p4 = pnand %p4045_p2, %p4039_p10 }
  0x23   : > { %4049 = shalt.err (!%p4046_p4)
}
  0x24   : > { %s4050_s21 = scalar_lea.vmem %s4322_s7, 512  ;;  %s4229_s25 = smov [#allocation5]  }
  0x25   : > { %p4051_p5 = scmp.ne.s32.totalorder %s4322_s7, %s4050_s21  ;;  %s4055_s27 = sshll.u32 %s4229_s25, 4  ;;  %s4056_s27 = int_to_ptr.vmem [resolvable:$false] %s4055_s27 }
  0x26   : > { %s4057_s28 = scalar_lea.vmem %s4056_s27, 1024  ;;  %p4058_p3 = scmp.lt.s32.totalorder %s4322_s7, %s4056_s27 }
  0x27   : > { %p4053_p7 = pnand %p4051_p5, %p4330_p8  ;;  %p4059_p0 = scmp.lt.s32.totalorder %s4057_s28, %s4050_s21 }
  0x29   : > { %p4054_p9 = pneg %p4053_p7  ;;  %p4060_p11 = por %p4059_p0, %p4058_p3 }
  0x2b   : > { %p4061_p12 = pnand %p4060_p11, %p4054_p9 }
  0x2d   : > { %4064 = shalt.err (!%p4061_p12)
}
  0x2e   : > { %3930 = dma.hbm_to_vmem [thread:$0]  (!%p4311_p6), %s4320_s5, 512, %s4322_s7, %s4324_s8  }
  0x2f   : > { %s4355_s29 = sadd.s32 4294967295, %s4227_s18   ;;  %s3386_s30 = sadd.s32 4294967294, %s4227_s18  }
  0x30   : > { %p44_p0 = scmp.ne.s32.totalorder %s4219_s16, %s4215_s15  ;;  %p5455_p3 = scmp.eq.s32.totalorder %s4355_s29, 0 }
  0x31   : > { %p141_p10 = scmp.eq.s32.totalorder %s4355_s29, 1  ;;  %p147_p13 = scmp.eq.s32.totalorder %s3386_s30, 1 }
  0x32   : > { %p3387_p1 = scmp.ge.s32.totalorder %s4227_s18, 1  ;;  %p4365_p2 = por %p5455_p3, %p44_p0 }
  0x33   : > { %p5477_p4 = scmp.ne.s32.totalorder %s4223_s17, %s4219_s16  ;;  %p4376_p7 = por %p147_p13, %p44_p0 }
  0x34   : > { %s5476_s6 = scalar_select %p4365_p2, 1, 0 }
  0x35   : > { %p4372_p5 = por %p141_p10, %p5477_p4  ;;  %p154_p9 = scmp.lt.s32.totalorder %s4227_s18, 3 }
  0x36   : > { %s5479_s7 = scalar_select %p4376_p7, 1, 0 }
  0x37   : > { %s5478_s5 = scalar_select %p4372_p5, 1, 0 }
  0x38   : > { %5480 = sst [smem:[#allocation18_spill]] %s5479_s7  ;;  %p4381_p11 = pnand %p3387_p1, %p154_p9 }
  0x39   : > { %s4230_s11 = smov [#allocation8]   ;;  %s3664_s14 = sshll.u32 %s4227_s18, 10 }
  0x3a   : > { %s5481_s9 = scalar_select %p4381_p11, 1, 0 }
  0x3b   : > { %s166_s12 = sshll.u32 %s4230_s11, 4  ;;  %p3920_p12 = pneg %p4381_p11  ;;  %s4385_s12 = int_to_ptr.vmem [resolvable:$true] %s166_s12 }
  0x3c   : > { %s4399_s25 = scalar_lea.hbm %s5448_s0, %s3664_s14  ;;  %s184_s27 = scalar_lea.vmem [#allocation2], %s3390_s24 }
  0x3d   : > { %p4391_p10 = pnand %p3920_p12, %p5455_p3  ;;  %s191_s28 = sshll.u32 %s184_s27, 4  ;;  %s4403_s28 = int_to_ptr.vmem [resolvable:$true] %s191_s28 }
  0x3e   : > { %s4065_s1 = scalar_lea.hbm %s5451_s3, 3456 }
  0x3f   : > { %p4066_p0 = scmp.ne.s32.totalorder %s5451_s3, %s4065_s1  ;;  %p4067_p13 = pneg %p4391_p10 }
  0x40   : > { %p4072_p9 = scmp.lt.u32.totalorder %s4065_s1, %s5451_s3 }
  0x41   : > { %p4068_p1 = pnand %p4067_p13, %p4066_p0 }
  0x43   : > { %p4069_p4 = pneg %p4068_p1 }
  0x45   : > { %p4074_p12 = pnand %p4072_p9, %p4069_p4 }
  0x47   : > { %4077 = shalt.err (!%p4074_p12)
}
  0x48   : > { %s4078_s24 = scalar_lea.vmem %s4385_s12, 3456  ;;  %p4086_p2 = scmp.lt.s32.totalorder %s4385_s12, %s4385_s12 }
  0x49   : > { %p4079_p3 = scmp.ne.s32.totalorder %s4385_s12, %s4078_s24  ;;  %p4087_p11 = scmp.lt.s32.totalorder %s4078_s24, %s4078_s24 }
  0x4b   : > { %p4081_p7 = pnand %p4079_p3, %p4067_p13  ;;  %p4088_p6 = por %p4087_p11, %p4086_p2 }
  0x4d   : > { %p4082_p5 = pneg %p4081_p7 }
  0x4f   : > { %p4089_p8 = pnand %p4088_p6, %p4082_p5 }
  0x51   : > { %4092 = shalt.err (!%p4089_p8)
}
  0x52   : > { %s4231_s17 = smov 128   ;;  %s4232_s1 = smov 8  }
  0x53   : > { %3923 = dma.hbm_to_vmem [thread:$0]  (!%p4391_p10), %s5451_s3, 3456, %s4385_s12, [#allocation9], %s4231_s17, %s4231_s17, %s4232_s1  }
  0x54   : > { %s3396_s27 = sshll.u32 %s4307_s23, 3  ;;  %s181_s30 = scalar_lea.sflag [#allocation3], %s4307_s23 }
  0x55   : > { %s4093_s11 = scalar_lea.hbm %s4399_s25, 2048  ;;  %p5483_p8 = scmp.ne.s32.totalorder %s5475_s10, 0 }
  0x56   : > { %p4094_p6 = scmp.ne.s32.totalorder %s4399_s25, %s4093_s11  ;;  %s4098_s24 = scalar_lea.hbm %s5448_s0, 4096 }
  0x57   : > { %p4099_p5 = scmp.lt.u32.totalorder %s4399_s25, %s5448_s0  ;;  %p4100_p7 = scmp.lt.u32.totalorder %s4098_s24, %s4093_s11 }
  0x58   : > { %p4096_p3 = pnand %p4094_p6, %p5483_p8  ;;  %p4102_p0 = scmp.lt.u32.totalorder %s4093_s11, %s4399_s25 }
  0x59   : > { %p4101_p11 = por %p4100_p7, %p4099_p5 }
  0x5a   : > { %p4097_p2 = pneg %p4096_p3 }
  0x5b   : > { %p4103_p13 = por %p4102_p0, %p4101_p11 }
  0x5d   : > { %p4104_p10 = pnand %p4103_p13, %p4097_p2 }
  0x5f   : > { %4107 = shalt.err (!%p4104_p10)
}
  0x60   : > { %s4108_s12 = scalar_lea.vmem %s4403_s28, 2048  ;;  %s4233_s13 = smov [#allocation2]  }
  0x61   : > { %p4109_p1 = scmp.ne.s32.totalorder %s4403_s28, %s4108_s12  ;;  %s4113_s17 = sshll.u32 %s4233_s13, 4  ;;  %s4114_s17 = int_to_ptr.vmem [resolvable:$false] %s4113_s17 }
  0x62   : > { %s4115_s19 = scalar_lea.vmem %s4114_s17, 4096  ;;  %p4116_p12 = scmp.lt.s32.totalorder %s4403_s28, %s4114_s17 }
  0x63   : > { %p4111_p4 = pnand %p4109_p1, %p5483_p8  ;;  %p4117_p6 = scmp.lt.s32.totalorder %s4115_s19, %s4108_s12 }
  0x65   : > { %p4112_p9 = pneg %p4111_p4  ;;  %p4118_p3 = por %p4117_p6, %p4116_p12 }
  0x67   : > { %p4119_p5 = pnand %p4118_p3, %p4112_p9 }
  0x69   : > { %4122 = shalt.err (!%p4119_p5)
}
  0x6a   : > { %s4234_s7 = smov 2048   ;;  %s4235_s1 = smov 1024  }
  0x6b   : > { %s4236_s22 = smov 64   ;;  %p5484_p2 = scmp.ne.s32.totalorder %s5473_s26, 0 }
  0x6c   : > { %s3666_s21 = sshll.u32 %s4227_s18, 7  ;;  %s224_s24 = scalar_lea.vmem [#allocation7], %s3396_s27 }
  0x6d   : > { %3927 = dma.hbm_to_vmem [thread:$0]  (!%p5484_p2), %s4399_s25, 2048, %s4403_s28, %s181_s30, %s4234_s7, %s4235_s1, %s4236_s22  }
  0x6e   : > { %s4455_s14 = scalar_lea.hbm %s5450_s2, %s3666_s21  ;;  %s232_s12 = sshll.u32 %s224_s24, 4  ;;  %s233_s12 = int_to_ptr.vmem [resolvable:$true] %s232_s12 }
  0x6f   : > { %s4123_s13 = scalar_lea.hbm %s4455_s14, 128  ;;  %s4128_s30 = scalar_lea.hbm %s5450_s2, 256 }
  0x70   : > { %p4124_p7 = scmp.ne.s32.totalorder %s4455_s14, %s4123_s13  ;;  %p4129_p13 = scmp.lt.u32.totalorder %s4455_s14, %s5450_s2 }
  0x71   : > { %p4130_p10 = scmp.lt.u32.totalorder %s4128_s30, %s4123_s13  ;;  %p4132_p4 = scmp.lt.u32.totalorder %s4123_s13, %s4455_s14 }
  0x72   : > { %p4126_p11 = pnand %p4124_p7, %p5483_p8 }
  0x73   : > { %p4131_p1 = por %p4130_p10, %p4129_p13 }
  0x74   : > { %p4127_p0 = pneg %p4126_p11 }
  0x75   : > { %p4133_p9 = por %p4132_p4, %p4131_p1 }
  0x77   : > { %p4134_p12 = pnand %p4133_p9, %p4127_p0 }
  0x79   : > { %4137 = shalt.err (!%p4134_p12)
}
  0x7a   : > { %s4138_s23 = scalar_lea.vmem %s233_s12, 128  ;;  %s4237_s27 = smov [#allocation7]  }
  0x7b   : > { %p4139_p6 = scmp.ne.s32.totalorder %s233_s12, %s4138_s23  ;;  %s4143_s7 = sshll.u32 %s4237_s27, 4  ;;  %s4144_s7 = int_to_ptr.vmem [resolvable:$false] %s4143_s7 }
  0x7c   : > { %s4145_s1 = scalar_lea.vmem %s4144_s7, 256  ;;  %p4146_p7 = scmp.lt.s32.totalorder %s233_s12, %s4144_s7 }
  0x7d   : > { %p4141_p3 = pnand %p4139_p6, %p5483_p8  ;;  %p4147_p11 = scmp.lt.s32.totalorder %s4145_s1, %s4138_s23 }
  0x7f   : > { %p4142_p5 = pneg %p4141_p3  ;;  %p4148_p2 = por %p4147_p11, %p4146_p7 }
  0x81   : > { %p4149_p10 = pnand %p4148_p2, %p4142_p5 }
  0x83   : > { %4152 = shalt.err (!%p4149_p10)
}
  0x84   : > { %p5485_p13 = scmp.ne.s32.totalorder %s5473_s26, 0  ;;  %p5486_p0 = scmp.ne.s32.totalorder %s5481_s9, 0 }
  0x85   : > { %s4480_s10 = sand.u32 (!%p5486_p0), 1, %s4219_s16   ;;  %p5487_p8 = scmp.ne.s32.totalorder (!%p5486_p0), %s5476_s6, 0 }
  0x86   : > { %3933 = dma.hbm_to_vmem [thread:$0]  (!%p5485_p13), %s4455_s14, 128, %s233_s12, %s4324_s8  }
  0x87   : > { %241 = sbr.rel (%p5486_p0) target bundleno = 1447 (0x5a7), region = 36  ;;  %s3400_s22 = sshll.u32 (!%p5486_p0), %s4480_s10, 7 }
  0x88   : > { %s244_s21 = scalar_lea.sflag (!%p5486_p0), [#allocation3], %s4480_s10  ;;  %s4484_s11 = scalar_lea.vmem (!%p5486_p0), [#allocation2], %s3400_s22 }
  0x8e   : > { %4198 = dma.done.wait (%p5487_p8), %s244_s21, 2048  }
  0x8f   : > { %4200 = vsyncadd (%p5487_p8), %s244_s21, 4294965248  ;;  %s252_s26 = sand.u32 1, %s4355_s29   ;;  %s3401_s8 = sshll.u32 %s4480_s10, 5 }
  0x90   : > { %s253_s9 = scalar_lea.sflag [#allocation6], %s252_s26  ;;  %s4492_s20 = scalar_lea.vmem [#allocation5], %s3401_s8 }
  0x91   : > { %4202 = dma.done.wait (%p5487_p8), %s253_s9, 640  }
  0x92   : > { %4204 = vsyncadd (%p5487_p8), %s253_s9, 4294966656  ;;  %s3402_s14 = sshll.u32 %s4480_s10, 3  ;;  %p5488_p2 = scmp.eq.s32.totalorder %s4355_s29, 0 }
  0x93   : > { %s4499_s24 = scalar_lea.vmem [#allocation7], %s3402_s14 }
  0x94   : > { %4206 = dma.done.wait (%p5488_p2), [#allocation9], 3456   ;;  %p5489_p1 = pmov %p5488_p2 }
  0x95   : > { %v4238_v0 = vmov 0.0   ;;  %v4239_v1 = vmov 0   ;;  %v309_v2 = vld [vmem:[%s4484_s11 + $0x8] sm:$0xff]  ;;  %v311_v4 = vld [vmem:[%s4484_s11 + $0x18] sm:$0xff]  ;;  %v308_v7 = vld [vmem:[%s4484_s11] sm:$0xff]  ;;  %vm5466_vm0 = vcmask 130048  }
  0x96   : > { %4208 = vsyncadd (%p5489_p1), [#allocation9], 4294963840  ;;  %429 = vmatprep.mubr.f32.mxu0 %v4238_v0  ;;  %518 = vmatprep.mubr.f32.mxu1 %v4238_v0  ;;  %v317_v3 = vld [vmem:[%s4484_s11 + $0x48] sm:$0xff]  ;;  %v319_v6 = vld [vmem:[%s4484_s11 + $0x58] sm:$0xff]  ;;  %vm5467_vm1 = vcmask 261120   ;;  %s3404_s6 = sshll.u32 %s4480_s10, 4 }
  0x97   : > { %3985 = vset.pattern.permute.xlu0 %v4239_v1  ;;  %3986 = vset.pattern.permute.xlu1 %v4239_v1  ;;  %v3668_v5 = vpack.c.bf16 %v317_v3, %v309_v2  ;;  %v316_v8 = vld [vmem:[%s4484_s11 + $0x40] sm:$0xff]  ;;  %v3672_v9 = vpack.c.bf16 %v319_v6, %v311_v4  ;;  %v310_v11 = vld [vmem:[%s4484_s11 + $0x10] sm:$0xff]  ;;  %v313_v15 = vld [vmem:[%s4484_s11 + $0x28] sm:$0xff]  ;;  %s3667_s12 = sshll.u32 %s4355_s29, 8  ;;  %s303_s13 = scalar_lea.vmem [#allocation10], %s3404_s6 }
  0x98   : > { %v3670_v10 = vpack.c.bf16 %v316_v8, %v308_v7  ;;  %v318_v12 = vld [vmem:[%s4484_s11 + $0x50] sm:$0xff]  ;;  %v321_v16 = vld [vmem:[%s4484_s11 + $0x68] sm:$0xff]  ;;  %v315_v17 = vld [vmem:[%s4484_s11 + $0x38] sm:$0xff]  ;;  %s3263_s25 = sshll.u32 %s303_s13, 4  ;;  %s5404_s17 = scalar_lea.hbm %s5452_s4, %s3667_s12  ;;  %s5406_s25 = int_to_ptr.vmem [resolvable:$true] %s3263_s25 }
  0x99   : > { %v324_v13 = vld [vmem:[#allocation8] sm:$0xff]  ;;  %3669 = vmatprep.subr.bf16.mxu0 %v3668_v5  ;;  %v3674_v14 = vpack.c.bf16 %v318_v12, %v310_v11  ;;  %3673 = vmatprep.subr.bf16.mxu1 %v3672_v9  ;;  %v3676_v18 = vpack.c.bf16 %v321_v16, %v313_v15  ;;  %v323_v19 = vld [vmem:[%s4484_s11 + $0x78] sm:$0xff]  ;;  %v312_v20 = vld [vmem:[%s4484_s11 + $0x20] sm:$0xff]  ;;  %v1056_v15 = vlaneseq  ;;  %s3249_s29 = scalar_lea.sflag [#allocation4], %s4480_s10  ;;  %s4153_s19 = scalar_lea.vmem %s5406_s25, 256 }
  0x9a   : > { %3671 = vmatpush1.bf16.msra.mxu0 %v3670_v10  ;;  %v320_v21 = vld [vmem:[%s4484_s11 + $0x60] sm:$0xff]  ;;  %v3680_v22 = vpack.c.bf16 %v323_v19, %v315_v17  ;;  %v314_v24 = vld [vmem:[%s4484_s11 + $0x30] sm:$0xff]  ;;  %v325_v28 = vld [vmem:[#allocation8 + $0x8] sm:$0xff]  ;;  %p4154_p4 = scmp.ne.s32.totalorder %s5406_s25, %s4153_s19  ;;  %p5565_p9 = scmp.ne.s32.totalorder %s5478_s5, 0 }
  0x9b   : > { %3675 = vmatpush1.bf16.msra.mxu1 %v3674_v14  ;;  %v3678_v23 = vpack.c.bf16 %v320_v21, %v312_v20  ;;  %v322_v25 = vld [vmem:[%s4484_s11 + $0x70] sm:$0xff]  ;;  %3677 = vmatprep.subr.bf16.mxu0 %v3676_v18  ;;  %v330_v29 = vld [vmem:[#allocation8 + $0x30] sm:$0xff]  ;;  %v329_v30 = vld [vmem:[#allocation8 + $0x28] sm:$0xff]  ;;  %s4243_s23 = smov [#allocation10]  }
  0x9c   : > { %v3682_v26 = vpack.c.bf16 %v322_v25, %v314_v24  ;;  %3681 = vmatprep.subr.bf16.mxu1 %v3680_v22  ;;  %v328_v27 = vld [vmem:[#allocation8 + $0x20] sm:$0xff]  ;;  %344 = vperm.xlu1 %3986, %v330_v29   ;;  %v326_v31 = vld [vmem:[#allocation8 + $0x10] sm:$0xff]  ;;  %v331_v32 = vld [vmem:[#allocation8 + $0x38] sm:$0xff]  ;;  %p4155_p12 = pnand %p4154_p4, %p5565_p9  ;;  %s4157_s27 = sshll.u32 %s4243_s23, 4  ;;  %s4158_s27 = int_to_ptr.vmem [resolvable:$false] %s4157_s27 }
  0x9d   : > { %3405 = vmatmul.mubr.msk.f32.vlgmr.msra.gmra.mrb[0].mxu0 %vm5466_vm0, %v324_v13  ;;  %334 = vperm.xlu0 %3985, %v328_v27   ;;  %v754_v33 = vld [vmem:[#allocation8 + $0x48] sm:$0xff]  ;;  %v327_v34 = vld [vmem:[#allocation8 + $0x18] sm:$0xff]  ;;  %v1848_v36 = vld [vmem:[#allocation8 + $0x90] sm:$0xff]  ;;  %s4159_s7 = scalar_lea.vmem %s4158_s27, 512  ;;  %p4160_p3 = scmp.lt.s32.totalorder %s5406_s25, %s4158_s27 }
  0x9e   : > { %3409 = vmatmul.mubr.msk.f32.vlgmr.msra.gmra.mrb[0].mxu1 %vm5466_vm0, %v324_v13  ;;  %435 = vmatprep.mubr.f32.mxu0 %v4238_v0  ;;  %v1847_v35 = vld [vmem:[#allocation8 + $0x88] sm:$0xff]  ;;  %v1849_v37 = vld [vmem:[#allocation8 + $0x98] sm:$0xff]  ;;  %v1850_v38 = vld [vmem:[#allocation8 + $0xa0] sm:$0xff]  ;;  %p4156_p6 = pneg %p4155_p12  ;;  %p4161_p5 = scmp.lt.s32.totalorder %s4159_s7, %s4153_s19 }
  0x9f   : > { %524 = vmatprep.mubr.f32.mxu1 %v4238_v0  ;;  %3679 = vmatpush1.bf16.msra.mxu0 %v3678_v23  ;;  %v2274_v39 = vld [vmem:[#allocation8 + $0xb8] sm:$0xff]  ;;  %v2275_v40 = vld [vmem:[#allocation8 + $0xc0] sm:$0xff]  ;;  %v2617_v41 = vld [vmem:[#allocation8 + $0xd0] sm:$0x1] }
  0xa0   : > { %3683 = vmatpush1.bf16.msra.mxu1 %v3682_v26  ;;  %349 = vperm.xlu1 %3986, %v331_v32   ;;  %p4162_p7 = por %p4161_p5, %p4160_p3 }
  0xa1   : > { %3406 = vmatmul.mubr.msk.f32.gmra.mrb[2].mxu0 %vm5466_vm0, %v325_v28  ;;  %339 = vperm.xlu0 %3985, %v329_v30   ;;  %v4579_v30 = vshrl.u32 %v1056_v15, 7 }
  0xa2   : > { %3410 = vmatmul.mubr.msk.f32.gmra.mrb[2].mxu1 %vm5466_vm0, %v325_v28  ;;  %441 = vmatprep.mubr.f32.mxu0 %v4238_v0  ;;  %p4163_p11 = pnand %p4162_p7, %p4156_p6 }
  0xa3   : > { %530 = vmatprep.mubr.f32.mxu1 %v4238_v0 }
  0xa4   : > { %1853 = vperm.xlu1 %3986, %v1847_v35  }
  0xa5   : > { %3407 = vmatmul.mubr.msk.f32.gmra.mrb[4].mxu0 %vm5466_vm0, %v326_v31  ;;  %757 = vperm.xlu0 %3985, %v754_v33  }
  0xa6   : > { %3411 = vmatmul.mubr.msk.f32.gmra.mrb[4].mxu1 %vm5466_vm0, %v326_v31  ;;  %447 = vmatprep.mubr.f32.mxu0 %v4238_v0 }
  0xa7   : > { %536 = vmatprep.mubr.f32.mxu1 %v4238_v0 }
  0xa8   : > { %1863 = vperm.xlu1 %3986, %v1849_v37  }
  0xa9   : > { %3408 = vmatmul.mubr.msk.f32.gmra.mrb[6].mxu0 %vm5466_vm0, %v327_v34  ;;  %1858 = vperm.xlu0 %3985, %v1848_v36  }
  0xaa   : > { %3412 = vmatmul.mubr.msk.f32.gmra.mrb[6].mxu1 %vm5466_vm0, %v327_v34  ;;  %607 = vmatprep.mubr.f32.mxu0 %v4238_v0 }
  0xab   : > { %696 = vmatprep.mubr.f32.mxu1 %v4238_v0 }
  0xac   : > { %2278 = vperm.xlu1 %3986, %v2274_v39  }
  0xad   : > { %3413 = vmatmul.mubr.msk.f32.vlgmr.msra.gmra.mrb[8].mxu0 %vm5466_vm0, %v324_v13  ;;  %1868 = vperm.xlu0 %3985, %v1850_v38  }
  0xae   : > { %3417 = vmatmul.mubr.msk.f32.vlgmr.msra.gmra.mrb[8].mxu1 %vm5466_vm0, %v324_v13  ;;  %613 = vmatprep.mubr.f32.mxu0 %v4238_v0 }
  0xaf   : > { %702 = vmatprep.mubr.f32.mxu1 %v4238_v0 }
  0xb0   : > { %2620 = vperm.xlu1 %3986, %v2617_v41  }
  0xb1   : > { %3414 = vmatmul.mubr.msk.f32.gmra.mrb[10].mxu0 %vm5466_vm0, %v325_v28  ;;  %2283 = vperm.xlu0 %3985, %v2275_v40  }
  0xb2   : > { %3418 = vmatmul.mubr.msk.f32.gmra.mrb[10].mxu1 %vm5466_vm0, %v325_v28  ;;  %619 = vmatprep.mubr.f32.mxu0 %v4238_v0 }
  0xb3   : > { %708 = vmatprep.mubr.f32.mxu1 %v4238_v0 }
  0xb5   : > { %3415 = vmatmul.mubr.msk.f32.gmra.mrb[12].mxu0 %vm5466_vm0, %v326_v31 }
  0xb6   : > { %3419 = vmatmul.mubr.msk.f32.gmra.mrb[12].mxu1 %vm5466_vm0, %v326_v31  ;;  %625 = vmatprep.mubr.f32.mxu0 %v4238_v0 }
  0xb7   : > { %714 = vmatprep.mubr.f32.mxu1 %v4238_v0 }
  0xb9   : > { %3416 = vmatmul.mubr.msk.f32.gmra.mrb[14].mxu0 %vm5466_vm0, %v327_v34 }
  0xba   : > { %3420 = vmatmul.mubr.msk.f32.gmra.mrb[14].mxu1 %vm5466_vm0, %v327_v34  ;;  %828 = vmatprep.mubr.f32.mxu0 %v4238_v0 }
  0xbb   : > { %899 = vmatprep.mubr.f32.mxu1 %v4238_v0 }
 0x11b   : > { %v4564_v56 = vpop.permute.xlu1 %344 }
 0x11c   : > { %v4555_v42 = vpop.permute.xlu0 %334 }
 0x11f   : > { %v4570_v16 = vpop.permute.xlu1 %349 }
 0x120   : > { %v4558_v48 = vpop.permute.xlu0 %339 }
 0x170   : > { %v431_v43 = vpop.f32.mrb[0].mxu0 }
 0x171   : > { %v520_v44 = vpop.f32.mrb[0].mxu1  ;;  %v433_v45 = vpop.f32.mrb[1].mxu0  ;;  %v432_v47 = vadd.f32 %v431_v43, %v4555_v42 }
 0x172   : > { %v522_v46 = vpop.f32.mrb[1].mxu1  ;;  %v521_v49 = vadd.f32 %v520_v44, %v4555_v42  ;;  %v434_v50 = vadd.f32 %v433_v45, %v4555_v42 }
 0x173   : > { %v523_v52 = vadd.f32 %v522_v46, %v4555_v42  ;;  %v721_v60 = vmax.f32 %v432_v47, 0.0  ;;  %v4583_v47 = vsub.s32 1, %v4579_v30 }
 0x174   : > { %v437_v51 = vpop.f32.mrb[2].mxu0  ;;  %v723_v63 = vmax.f32 %v521_v49, 0.0  ;;  %v722_v1 = vmax.f32 %v434_v50, 0.0 }
 0x175   : > { %v438_v53 = vadd.f32 %v437_v51, %v4558_v48  ;;  %v526_v54 = vpop.f32.mrb[2].mxu1  ;;  %v439_v55 = vpop.f32.mrb[3].mxu0  ;;  %v724_v5 = vmax.f32 %v523_v52, 0.0  ;;  %v4588_v52 = vld [vmem:[%s4492_s20] ss:$4 sm:$0xff] }
 0x176   : > { %v527_v57 = vadd.f32 %v526_v54, %v4558_v48  ;;  %v440_v58 = vadd.f32 %v439_v55, %v4558_v48  ;;  %v528_v59 = vpop.f32.mrb[3].mxu1 }
 0x177   : > { %v729_v61 = vmax.f32 %v438_v53, 0.0  ;;  %v529_v62 = vadd.f32 %v528_v59, %v4558_v48  ;;  %v4595_v59 = vsub.s32 3, %v4579_v30 }
 0x178   : > { %v731_v2 = vmax.f32 %v527_v57, 0.0  ;;  %v730_v3 = vmax.f32 %v440_v58, 0.0  ;;  %v443_v4 = vpop.f32.mrb[4].mxu0  ;;  %v4592_v58 = vld [vmem:[#allocation8 + $0x40] sm:$0xff] }
 0x179   : > { %v3686_v6 = vpack.c.bf16 %v729_v61, %v721_v60  ;;  %v732_v7 = vmax.f32 %v529_v62, 0.0  ;;  %v532_v8 = vpop.f32.mrb[4].mxu1  ;;  %v445_v9 = vpop.f32.mrb[5].mxu0  ;;  %v444_v14 = vadd.f32 %v443_v4, %v4564_v56  ;;  %v4608_v4 = vrot.slane %v4588_v52, %v4583_v47 }
 0x17a   : > { %v3694_v10 = vpack.c.bf16 %v731_v2, %v723_v63  ;;  %v3684_v11 = vpack.c.bf16 %v730_v3, %v722_v1  ;;  %v534_v12 = vpop.f32.mrb[5].mxu1  ;;  %v533_v17 = vadd.f32 %v532_v8, %v4564_v56  ;;  %v446_v18 = vadd.f32 %v445_v9, %v4564_v56 }
 0x17b   : > { %v3692_v13 = vpack.c.bf16 %v732_v7, %v724_v5  ;;  %v535_v20 = vadd.f32 %v534_v12, %v4564_v56  ;;  %v737_v27 = vmax.f32 %v444_v14, 0.0  ;;  %v4603_v63 = vsub.s32 2, %v4579_v30 }
 0x17c   : > { %v449_v19 = vpop.f32.mrb[6].mxu0  ;;  %3685 = vmatprep.subr.bf16.mxu0 %v3684_v11  ;;  %v739_v31 = vmax.f32 %v533_v17, 0.0  ;;  %v738_v32 = vmax.f32 %v446_v18, 0.0  ;;  %v4616_v14 = vadd.s32 8, %v4579_v30  ;;  %vm1095_vm2 = vcmp.eq.s32.totalorder %v4579_v30, %v4608_v4 }
 0x17d   : > { %v450_v21 = vadd.f32 %v449_v19, %v4570_v16  ;;  %v538_v22 = vpop.f32.mrb[6].mxu1  ;;  %3693 = vmatprep.subr.bf16.mxu1 %v3692_v13  ;;  %v451_v23 = vpop.f32.mrb[7].mxu0  ;;  %3687 = vmatpush1.bf16.msra.mxu0 %v3686_v6  ;;  %v740_v36 = vmax.f32 %v535_v20, 0.0  ;;  %v4621_v19 = vrot.slane %v4588_v52, %v4595_v59 }
 0x17e   : > { %v539_v24 = vadd.f32 %v538_v22, %v4570_v16  ;;  %v452_v25 = vadd.f32 %v451_v23, %v4570_v16  ;;  %v540_v26 = vpop.f32.mrb[7].mxu1  ;;  %3695 = vmatpush1.bf16.msra.mxu1 %v3694_v10  ;;  %vm1103_vm3 = vcmp.eq.s32.totalorder %v4616_v14, %v4608_v4 }
 0x17f   : > { %v745_v28 = vmax.f32 %v450_v21, 0.0  ;;  %v541_v29 = vadd.f32 %v540_v26, %v4570_v16  ;;  %v4634_v26 = vrot.slane %v4588_v52, %v4603_v63  ;;  %vm1097_vm4 = vcmp.eq.s32.totalorder %v4579_v30, %v4621_v19  ;;  %vm4666_vm8 = vmpackc.low %vm1103_vm3, %vm1095_vm2 }
 0x180   : > { %v747_v33 = vmax.f32 %v539_v24, 0.0  ;;  %v746_v34 = vmax.f32 %v452_v25, 0.0  ;;  %v609_v35 = vpop.f32.mrb[8].mxu0  ;;  %vm1105_vm5 = vcmp.eq.s32.totalorder %v4616_v14, %v4621_v19 }
 0x181   : > { %v3690_v37 = vpack.c.bf16 %v745_v28, %v737_v27  ;;  %v748_v38 = vmax.f32 %v541_v29, 0.0  ;;  %v698_v39 = vpop.f32.mrb[8].mxu1  ;;  %v611_v40 = vpop.f32.mrb[9].mxu0  ;;  %v610_v46 = vadd.f32 %v609_v35, %v4555_v42  ;;  %vm1096_vm9 = vcmp.eq.s32.totalorder %v4579_v30, %v4634_v26  ;;  %vm4677_vm11 = vmpackc.low %vm1105_vm5, %vm1097_vm4 }
 0x182   : > { %v3698_v41 = vpack.c.bf16 %v747_v33, %v739_v31  ;;  %v3688_v43 = vpack.c.bf16 %v746_v34, %v738_v32  ;;  %v700_v44 = vpop.f32.mrb[9].mxu1  ;;  %v699_v49 = vadd.f32 %v698_v39, %v4555_v42  ;;  %v612_v50 = vadd.f32 %v611_v40, %v4555_v42 }
 0x183   : > { %v3696_v45 = vpack.c.bf16 %v748_v38, %v740_v36  ;;  %v701_v53 = vadd.f32 %v700_v44, %v4555_v42  ;;  %v4600_v42 = vsub.s32 0, %v4579_v30  ;;  %v725_v1 = vmax.f32 %v610_v46, 0.0 }
 0x184   : > { %v615_v51 = vpop.f32.mrb[10].mxu0  ;;  %3689 = vmatprep.subr.bf16.mxu0 %v3688_v43  ;;  %v727_v5 = vmax.f32 %v699_v49, 0.0  ;;  %v726_v6 = vmax.f32 %v612_v50, 0.0  ;;  %v4649_v38 = vadd.s32 24, %v4579_v30  ;;  %v4654_v49 = vld [vmem:[%s4492_s20 + $0x1] ss:$4 sm:$0xff]  ;;  %vm1104_vm10 = vcmp.eq.s32.totalorder %v4616_v14, %v4634_v26 }
 0x185   : > { %v616_v54 = vadd.f32 %v615_v51, %v4558_v48  ;;  %v704_v55 = vpop.f32.mrb[10].mxu1  ;;  %3697 = vmatprep.subr.bf16.mxu1 %v3696_v45  ;;  %v617_v57 = vpop.f32.mrb[11].mxu0  ;;  %3691 = vmatpush1.bf16.msra.mxu0 %v3690_v37  ;;  %v728_v10 = vmax.f32 %v701_v53, 0.0  ;;  %v4626_v22 = vrot.slane %v4588_v52, %v4600_v42  ;;  %vm4706_vm3 = vmpackc.low %vm1104_vm10, %vm1096_vm9 }
 0x186   : > { %v705_v60 = vadd.f32 %v704_v55, %v4558_v48  ;;  %v618_v61 = vadd.f32 %v617_v57, %v4558_v48  ;;  %v706_v62 = vpop.f32.mrb[11].mxu1  ;;  %3699 = vmatpush1.bf16.msra.mxu1 %v3698_v41  ;;  %vm1119_vm13 = vcmp.eq.s32.totalorder %v4649_v38, %v4608_v4  ;;  %v1199_v55 = vrot.slane %v4654_v49, %v4583_v47 }
 0x187   : > { %v733_v2 = vmax.f32 %v616_v54, 0.0  ;;  %v707_v3 = vadd.f32 %v706_v62, %v4558_v48  ;;  %vm1094_vm6 = vcmp.eq.s32.totalorder %v4579_v30, %v4626_v22  ;;  %vm1102_vm7 = vcmp.eq.s32.totalorder %v4616_v14, %v4626_v22 }
 0x188   : > { %v735_v7 = vmax.f32 %v705_v60, 0.0  ;;  %v734_v8 = vmax.f32 %v618_v61, 0.0  ;;  %v621_v9 = vpop.f32.mrb[12].mxu0  ;;  %3421 = vmatmul.mubr.msk.f32.vlgmr.msra.gmra.mrb[16].mxu0 %vm5467_vm1, %v4592_v58  ;;  %vm4687_vm14 = vmpackc.low %vm1102_vm7, %vm1094_vm6  ;;  %vm1121_vm2 = vcmp.eq.s32.totalorder %v4649_v38, %v4621_v19  ;;  %v1207_v60 = vrot.slane %v4654_v49, %v4595_v59 }
 0x189   : > { %v3702_v11 = vpack.c.bf16 %v733_v2, %v725_v1  ;;  %v736_v12 = vmax.f32 %v707_v3, 0.0  ;;  %v710_v13 = vpop.f32.mrb[12].mxu1  ;;  %3422 = vmatmul.mubr.msk.f32.vlgmr.msra.gmra.mrb[16].mxu1 %vm5467_vm1, %v4592_v58  ;;  %v623_v48 = vpop.f32.mrb[13].mxu0  ;;  %970 = vmatprep.mubr.f32.mxu0 %v4238_v0  ;;  %v622_v21 = vadd.f32 %v621_v9, %v4564_v56  ;;  %v4240_v61 = vmov 1.0|1.0  }
 0x18a   : > { %v3710_v15 = vpack.c.bf16 %v735_v7, %v727_v5  ;;  %v3700_v17 = vpack.c.bf16 %v734_v8, %v726_v6  ;;  %v712_v18 = vpop.f32.mrb[13].mxu1  ;;  %1041 = vmatprep.mubr.f32.mxu1 %v4238_v0  ;;  %v711_v23 = vadd.f32 %v710_v13, %v4564_v56  ;;  %v624_v24 = vadd.f32 %v623_v48, %v4564_v56 }
 0x18b   : > { %v3708_v20 = vpack.c.bf16 %v736_v12, %v728_v10  ;;  %v713_v27 = vadd.f32 %v712_v18, %v4564_v56  ;;  %v4645_v56 = vadd.s32 16, %v4579_v30  ;;  %v741_v35 = vmax.f32 %v622_v21, 0.0 }
 0x18c   : > { %v627_v25 = vpop.f32.mrb[14].mxu0  ;;  %3701 = vmatprep.subr.bf16.mxu0 %v3700_v17  ;;  %v743_v39 = vmax.f32 %v711_v23, 0.0  ;;  %v742_v40 = vmax.f32 %v624_v24, 0.0  ;;  %vm1118_vm5 = vcmp.eq.s32.totalorder %v4649_v38, %v4626_v22  ;;  %v1195_v1 = vrot.slane %v4654_v49, %v4600_v42 }
 0x18d   : > { %v628_v28 = vadd.f32 %v627_v25, %v4570_v16  ;;  %v716_v29 = vpop.f32.mrb[14].mxu1  ;;  %3709 = vmatprep.subr.bf16.mxu1 %v3708_v20  ;;  %v629_v31 = vpop.f32.mrb[15].mxu0  ;;  %3703 = vmatpush1.bf16.msra.mxu0 %v3702_v11  ;;  %v744_v44 = vmax.f32 %v713_v27, 0.0  ;;  %vm1111_vm12 = vcmp.eq.s32.totalorder %v4645_v56, %v4608_v4  ;;  %vm1113_vm15 = vcmp.eq.s32.totalorder %v4645_v56, %v4621_v19  ;;  %v4753_v4 = vld [vmem:[%s4492_s20 + $0x2] ss:$4 sm:$0xff] }
 0x18e   : > { %v717_v32 = vadd.f32 %v716_v29, %v4570_v16  ;;  %v630_v33 = vadd.f32 %v629_v31, %v4570_v16  ;;  %v718_v34 = vpop.f32.mrb[15].mxu1  ;;  %3711 = vmatpush1.bf16.msra.mxu1 %v3710_v15  ;;  %vm1110_vm4 = vcmp.eq.s32.totalorder %v4645_v56, %v4626_v22  ;;  %vm3720_vm6 = vmpackc.low %vm1119_vm13, %vm1111_vm12  ;;  %vm1112_vm7 = vcmp.eq.s32.totalorder %v4645_v56, %v4634_v26 }
 0x18f   : > { %v749_v36 = vmax.f32 %v628_v28, 0.0  ;;  %v719_v37 = vadd.f32 %v718_v34, %v4570_v16  ;;  %v1203_v2 = vrot.slane %v4654_v49, %v4603_v63  ;;  %vm3744_vm9 = vmpackc.low %vm1121_vm2, %vm1113_vm15  ;;  %vm1225_vm10 = vcmp.eq.s32.totalorder %v4579_v30, %v1199_v55  ;;  %v4924_v28 = vld [vmem:[#allocation8 + $0x50] sm:$0xff] }
 0x190   : > { %v751_v41 = vmax.f32 %v717_v32, 0.0  ;;  %v750_v43 = vmax.f32 %v630_v33, 0.0  ;;  %vm4746_vm12 = vmpackc.low %vm1118_vm5, %vm1110_vm4  ;;  %vm1227_vm13 = vcmp.eq.s32.totalorder %v4579_v30, %v1207_v60  ;;  %vm1235_vm0 = vcmp.eq.s32.totalorder %v4616_v14, %v1207_v60 }
 0x191   : > { %v3706_v45 = vpack.c.bf16 %v749_v36, %v741_v35  ;;  %v752_v46 = vmax.f32 %v719_v37, 0.0  ;;  %vm1224_vm15 = vcmp.eq.s32.totalorder %v4579_v30, %v1195_v1  ;;  %vm1232_vm2 = vcmp.eq.s32.totalorder %v4616_v14, %v1195_v1  ;;  %v4978_v37 = vld [vmem:[#allocation8 + $0x58] sm:$0xff] }
 0x192   : > { %v3714_v50 = vpack.c.bf16 %v751_v41, %v743_v39  ;;  %v3704_v51 = vpack.c.bf16 %v750_v43, %v742_v40  ;;  %vm1226_vm5 = vcmp.eq.s32.totalorder %v4579_v30, %v1203_v2  ;;  %v1329_v6 = vrot.slane %v4753_v4, %v4583_v47 }
 0x193   : > { %v3712_v16 = vpack.c.bf16 %v752_v46, %v744_v44  ;;  %v1337_v8 = vrot.slane %v4753_v4, %v4595_v59  ;;  %v1325_v10 = vrot.slane %v4753_v4, %v4600_v42  ;;  %v1333_v11 = vrot.slane %v4753_v4, %v4603_v63 }
 0x194   : > { %3705 = vmatprep.subr.bf16.mxu0 %v3704_v51  ;;  %v4820_v12 = vsub.s32 5, %v4579_v30  ;;  %v4832_v48 = vsub.s32 7, %v4579_v30  ;;  %v4845_v17 = vsub.s32 4, %v4579_v30  ;;  %v4853_v18 = vsub.s32 6, %v4579_v30 }
 0x195   : > { %3713 = vmatprep.subr.bf16.mxu1 %v3712_v16  ;;  %3707 = vmatpush1.bf16.msra.mxu0 %v3706_v45  ;;  %v5516_v25 = vmov 0  ;;  %v5030_v45 = vld [vmem:[#allocation8 + $0x60] sm:$0xff] }
 0x196   : > { %3715 = vmatpush1.bf16.msra.mxu1 %v3714_v50  ;;  %3717 = vmatprep.subr.msk.bf16.mxu0 %vm4666_vm8, %v4240_v61  ;;  %vm1120_vm8 = vcmp.eq.s32.totalorder %v4649_v38, %v4634_v26  ;;  %v1085_v19 = vrot.slane %v4588_v52, %v4820_v12  ;;  %v1093_v21 = vrot.slane %v4588_v52, %v4832_v48 }
 0x197   : > { %3741 = vmatprep.subr.msk.bf16.mxu1 %vm4677_vm11, %v4240_v61  ;;  %vm1233_vm11 = vcmp.eq.s32.totalorder %v4616_v14, %v1199_v55  ;;  %v1081_v23 = vrot.slane %v4588_v52, %v4845_v17  ;;  %v1089_v24 = vrot.slane %v4588_v52, %v4853_v18  ;;  %v1215_v27 = vrot.slane %v4654_v49, %v4820_v12 }
 0x198   : > { %3423 = vmatmul.mubr.msk.f32.vlgmr.msra.gmra.mrb[18].mxu0 %vm5467_vm1, %v4592_v58  ;;  %vm3724_vm4 = vmpackc.low %vm1233_vm11, %vm1225_vm10  ;;  %vm1251_vm10 = vcmp.eq.s32.totalorder %v4649_v38, %v1207_v60  ;;  %v1223_v31 = vrot.slane %v4654_v49, %v4832_v48  ;;  %v1211_v33 = vrot.slane %v4654_v49, %v4845_v17  ;;  %v1219_v35 = vrot.slane %v4654_v49, %v4853_v18 }
 0x199   : > { %3424 = vmatmul.mubr.msk.f32.vlgmr.msra.gmra.mrb[18].mxu1 %vm5467_vm1, %v4592_v58  ;;  %3719 = vmatpush1.bf16.msk.msra.mxu0 %vm4687_vm14, %v4240_v61  ;;  %vm4762_vm14 = vmpackc.low %vm1120_vm8, %vm1112_vm7  ;;  %vm1241_vm7 = vcmp.eq.s32.totalorder %v4645_v56, %v1199_v55  ;;  %vm1249_vm8 = vcmp.eq.s32.totalorder %v4649_v38, %v1199_v55  ;;  %vm1108_vm1 = vcmp.eq.s32.totalorder %v4616_v14, %v1089_v24 }
 0x19a   : > { %3743 = vmatpush1.bf16.msk.msra.mxu1 %vm4706_vm3, %v4240_v61  ;;  %3721 = vmatprep.subr.msk.bf16.mxu0 %vm3720_vm6, %v4240_v61  ;;  %vm1234_vm3 = vcmp.eq.s32.totalorder %v4616_v14, %v1203_v2  ;;  %vm4772_vm6 = vmpackc.low %vm1235_vm0, %vm1227_vm13  ;;  %vm1243_vm0 = vcmp.eq.s32.totalorder %v4645_v56, %v1207_v60  ;;  %vm1248_vm13 = vcmp.eq.s32.totalorder %v4649_v38, %v1195_v1 }
 0x19b   : > { %3745 = vmatprep.subr.msk.bf16.mxu1 %vm3744_vm9, %v4240_v61  ;;  %1527 = vmatprep.mubr.f32.mxu0 %v4238_v0  ;;  %vm4784_vm9 = vmpackc.low %vm1232_vm2, %vm1224_vm15  ;;  %vm1242_vm15 = vcmp.eq.s32.totalorder %v4645_v56, %v1203_v2  ;;  %vm1250_vm2 = vcmp.eq.s32.totalorder %v4649_v38, %v1203_v2  ;;  %v1345_v44 = vrot.slane %v4753_v4, %v4820_v12 }
 0x19c   : > { %1610 = vmatprep.mubr.f32.mxu1 %v4238_v0  ;;  %vm4798_vm11 = vmpackc.low %vm1234_vm3, %vm1226_vm5  ;;  %vm1355_vm5 = vcmp.eq.s32.totalorder %v4579_v30, %v1329_v6  ;;  %vm1363_vm3 = vcmp.eq.s32.totalorder %v4616_v14, %v1329_v6  ;;  %v1353_v49 = vrot.slane %v4753_v4, %v4832_v48  ;;  %v1341_v51 = vrot.slane %v4753_v4, %v4845_v17 }
 0x19d   : > { %3723 = vmatpush1.bf16.msk.msra.mxu0 %vm4746_vm12, %v4240_v61  ;;  %vm1240_vm12 = vcmp.eq.s32.totalorder %v4645_v56, %v1195_v1  ;;  %v1349_v16 = vrot.slane %v4753_v4, %v4853_v18  ;;  %v5163_v1 = vpop.permute.xlu0 %757 }
 0x19e   : > { %3747 = vmatpush1.bf16.msk.msra.mxu1 %vm4762_vm14, %v4240_v61  ;;  %3725 = vmatprep.subr.msk.bf16.mxu0 %vm3724_vm4, %v4240_v61  ;;  %vm3728_vm14 = vmpackc.low %vm1249_vm8, %vm1241_vm7  ;;  %vm1357_vm7 = vcmp.eq.s32.totalorder %v4579_v30, %v1337_v8  ;;  %vm1365_vm8 = vcmp.eq.s32.totalorder %v4616_v14, %v1337_v8 }
 0x19f   : > { %3749 = vmatprep.subr.msk.bf16.mxu1 %vm4772_vm6, %v4240_v61  ;;  %vm3752_vm4 = vmpackc.low %vm1251_vm10, %vm1243_vm0  ;;  %vm1362_vm10 = vcmp.eq.s32.totalorder %v4616_v14, %v1325_v10 }
 0x1a0   : > { %vm4825_vm6 = vmpackc.low %vm1248_vm13, %vm1240_vm12  ;;  %vm1364_vm13 = vcmp.eq.s32.totalorder %v4616_v14, %v1333_v11 }
 0x1a1   : > { %3727 = vmatpush1.bf16.msk.msra.mxu0 %vm4784_vm9, %v4240_v61  ;;  %vm4838_vm0 = vmpackc.low %vm1250_vm2, %vm1242_vm15  ;;  %vm1354_vm9 = vcmp.eq.s32.totalorder %v4579_v30, %v1325_v10  ;;  %vm1371_vm15 = vcmp.eq.s32.totalorder %v4645_v56, %v1329_v6  ;;  %vm1379_vm2 = vcmp.eq.s32.totalorder %v4649_v38, %v1329_v6 }
 0x1a2   : > { %3751 = vmatpush1.bf16.msk.msra.mxu1 %vm4798_vm11, %v4240_v61  ;;  %3729 = vmatprep.subr.msk.bf16.mxu0 %vm3728_vm14, %v4240_v61  ;;  %vm3732_vm12 = vmpackc.low %vm1363_vm3, %vm1355_vm5  ;;  %vm1356_vm11 = vcmp.eq.s32.totalorder %v4579_v30, %v1333_v11  ;;  %vm1373_vm5 = vcmp.eq.s32.totalorder %v4645_v56, %v1337_v8  ;;  %vm1381_vm3 = vcmp.eq.s32.totalorder %v4649_v38, %v1337_v8 }
 0x1a3   : > { %3753 = vmatprep.subr.msk.bf16.mxu1 %vm3752_vm4, %v4240_v61  ;;  %vm3756_vm14 = vmpackc.low %vm1365_vm8, %vm1357_vm7  ;;  %vm1378_vm8 = vcmp.eq.s32.totalorder %v4649_v38, %v1325_v10 }
 0x1a4   : > { %vm4862_vm4 = vmpackc.low %vm1362_vm10, %vm1354_vm9  ;;  %vm1380_vm10 = vcmp.eq.s32.totalorder %v4649_v38, %v1333_v11 }
 0x1a5   : > { %3731 = vmatpush1.bf16.msk.msra.mxu0 %vm4825_vm6, %v4240_v61  ;;  %vm4874_vm7 = vmpackc.low %vm1364_vm13, %vm1356_vm11  ;;  %vm1370_vm6 = vcmp.eq.s32.totalorder %v4645_v56, %v1325_v10  ;;  %vm1099_vm11 = vcmp.eq.s32.totalorder %v4579_v30, %v1085_v19  ;;  %vm1107_vm13 = vcmp.eq.s32.totalorder %v4616_v14, %v1085_v19 }
 0x1a6   : > { %3755 = vmatpush1.bf16.msk.msra.mxu1 %vm4838_vm0, %v4240_v61  ;;  %3733 = vmatprep.subr.msk.bf16.mxu0 %vm3732_vm12, %v4240_v61  ;;  %vm3736_vm9 = vmpackc.low %vm1379_vm2, %vm1371_vm15  ;;  %vm1372_vm0 = vcmp.eq.s32.totalorder %v4645_v56, %v1333_v11  ;;  %vm1101_vm15 = vcmp.eq.s32.totalorder %v4579_v30, %v1093_v21  ;;  %vm1109_vm2 = vcmp.eq.s32.totalorder %v4616_v14, %v1093_v21 }
 0x1a7   : > { %3757 = vmatprep.subr.msk.bf16.mxu1 %vm3756_vm14, %v4240_v61  ;;  %vm3760_vm12 = vmpackc.low %vm1381_vm3, %vm1373_vm5  ;;  %vm1106_vm3 = vcmp.eq.s32.totalorder %v4616_v14, %v1081_v23 }
 0x1a8   : > { %vm4894_vm14 = vmpackc.low %vm1378_vm8, %vm1370_vm6  ;;  %vm1100_vm8 = vcmp.eq.s32.totalorder %v4579_v30, %v1089_v24 }
 0x1a9   : > { %3735 = vmatpush1.bf16.msk.msra.mxu0 %vm4862_vm4, %v4240_v61  ;;  %v5517_v25 = vsel %vm4894_vm14, 4294967295, %v5516_v25  ;;  %vm4904_vm5 = vmpackc.low %vm1380_vm10, %vm1372_vm0  ;;  %vm1098_vm4 = vcmp.eq.s32.totalorder %v4579_v30, %v1081_v23  ;;  %vm5468_vm10 = vcmask 785408  }
 0x1aa   : > { %3759 = vmatpush1.bf16.msk.msra.mxu1 %vm4874_vm7, %v4240_v61  ;;  %3737 = vmatprep.subr.msk.bf16.mxu0 %vm3736_vm9, %v4240_v61  ;;  %vm3764_vm6 = vmpackc.low %vm1107_vm13, %vm1099_vm11  ;;  %vm1115_vm7 = vcmp.eq.s32.totalorder %v4645_v56, %v1085_v19  ;;  %vm1123_vm9 = vcmp.eq.s32.totalorder %v4649_v38, %v1085_v19  ;;  %vm5522_vm0 = vnez %v5517_v25  ;;  %vm1117_vm11 = vcmp.eq.s32.totalorder %v4645_v56, %v1093_v21 }
 0x1ab   : > { %3761 = vmatprep.subr.msk.bf16.mxu1 %vm3760_vm12, %v4240_v61  ;;  %vm4913_vm14 = vmpackc.low %vm1109_vm2, %vm1101_vm15  ;;  %vm1125_vm13 = vcmp.eq.s32.totalorder %v4649_v38, %v1093_v21  ;;  %vm1114_vm2 = vcmp.eq.s32.totalorder %v4645_v56, %v1081_v23 }
 0x1ac   : > { %vm4926_vm12 = vmpackc.low %vm1106_vm3, %vm1098_vm4  ;;  %vm1122_vm4 = vcmp.eq.s32.totalorder %v4649_v38, %v1081_v23  ;;  %vm1124_vm3 = vcmp.eq.s32.totalorder %v4649_v38, %v1089_v24 }
 0x1ad   : > { %3739 = vmatpush1.bf16.msk.msra.mxu0 %vm5522_vm0, %v4240_v61  ;;  %vm4940_vm15 = vmpackc.low %vm1108_vm1, %vm1100_vm8  ;;  %vm1116_vm1 = vcmp.eq.s32.totalorder %v4645_v56, %v1089_v24  ;;  %vm1237_vm8 = vcmp.eq.s32.totalorder %v4616_v14, %v1215_v27  ;;  %vm1239_vm0 = vcmp.eq.s32.totalorder %v4616_v14, %v1223_v31 }
 0x1ae   : > { %3763 = vmatpush1.bf16.msk.msra.mxu1 %vm4904_vm5, %v4240_v61  ;;  %3765 = vmatprep.subr.msk.bf16.mxu0 %vm3764_vm6, %v4240_v61  ;;  %vm4955_vm5 = vmpackc.low %vm1123_vm9, %vm1115_vm7  ;;  %vm1229_vm6 = vcmp.eq.s32.totalorder %v4579_v30, %v1215_v27  ;;  %vm1231_vm9 = vcmp.eq.s32.totalorder %v4579_v30, %v1223_v31 }
 0x1af   : > { %3789 = vmatprep.subr.msk.bf16.mxu1 %vm4913_vm14, %v4240_v61  ;;  %vm4967_vm14 = vmpackc.low %vm1125_vm13, %vm1117_vm11  ;;  %vm1228_vm11 = vcmp.eq.s32.totalorder %v4579_v30, %v1211_v33  ;;  %vm1236_vm13 = vcmp.eq.s32.totalorder %v4616_v14, %v1211_v33 }
 0x1b0   : > { %3547 = vmatmul.mubr.msk.f32.vlgmr.msra.gmra.mrb[20].mxu0 %vm5468_vm10, %v4924_v28  ;;  %vm4982_vm7 = vmpackc.low %vm1122_vm4, %vm1114_vm2  ;;  %vm1230_vm2 = vcmp.eq.s32.totalorder %v4579_v30, %v1219_v35  ;;  %vm1238_vm4 = vcmp.eq.s32.totalorder %v4616_v14, %v1219_v35 }
 0x1b1   : > { %3574 = vmatmul.mubr.msk.f32.vlgmr.msra.gmra.mrb[20].mxu1 %vm5468_vm10, %v4924_v28  ;;  %3767 = vmatpush1.bf16.msk.msra.mxu0 %vm4926_vm12, %v4240_v61  ;;  %vm4994_vm12 = vmpackc.low %vm1124_vm3, %vm1116_vm1  ;;  %vm1253_vm3 = vcmp.eq.s32.totalorder %v4649_v38, %v1215_v27 }
 0x1b2   : > { %3791 = vmatpush1.bf16.msk.msra.mxu1 %vm4940_vm15, %v4240_v61  ;;  %1533 = vmatprep.mubr.f32.mxu0 %v4238_v0  ;;  %vm5006_vm15 = vmpackc.low %vm1237_vm8, %vm1229_vm6  ;;  %vm1247_vm6 = vcmp.eq.s32.totalorder %v4645_v56, %v1223_v31  ;;  %vm1255_vm8 = vcmp.eq.s32.totalorder %v4649_v38, %v1223_v31 }
 0x1b3   : > { %1616 = vmatprep.mubr.f32.mxu1 %v4238_v0  ;;  %3769 = vmatprep.subr.msk.bf16.mxu0 %vm4955_vm5, %v4240_v61  ;;  %vm5017_vm1 = vmpackc.low %vm1239_vm0, %vm1231_vm9  ;;  %vm1245_vm5 = vcmp.eq.s32.totalorder %v4645_v56, %v1215_v27  ;;  %vm1244_vm9 = vcmp.eq.s32.totalorder %v4645_v56, %v1211_v33  ;;  %vm1252_vm0 = vcmp.eq.s32.totalorder %v4649_v38, %v1211_v33 }
 0x1b4   : > { %3548 = vmatmul.mubr.msk.f32.gmra.mrb[22].mxu0 %vm5468_vm10, %v4978_v37  ;;  %3793 = vmatprep.subr.msk.bf16.mxu1 %vm4967_vm14, %v4240_v61  ;;  %vm5036_vm14 = vmpackc.low %vm1236_vm13, %vm1228_vm11  ;;  %vm1246_vm11 = vcmp.eq.s32.totalorder %v4645_v56, %v1219_v35  ;;  %vm1254_vm13 = vcmp.eq.s32.totalorder %v4649_v38, %v1219_v35 }
 0x1b5   : > { %3575 = vmatmul.mubr.msk.f32.gmra.mrb[22].mxu1 %vm5468_vm10, %v4978_v37  ;;  %3771 = vmatpush1.bf16.msk.msra.mxu0 %vm4982_vm7, %v4240_v61  ;;  %vm5052_vm7 = vmpackc.low %vm1238_vm4, %vm1230_vm2  ;;  %vm1359_vm2 = vcmp.eq.s32.totalorder %v4579_v30, %v1345_v44  ;;  %vm1367_vm4 = vcmp.eq.s32.totalorder %v4616_v14, %v1345_v44 }
 0x1b6   : > { %3795 = vmatpush1.bf16.msk.msra.mxu1 %vm4994_vm12, %v4240_v61  ;;  %1539 = vmatprep.mubr.f32.mxu0 %v4238_v0  ;;  %vm3776_vm12 = vmpackc.low %vm1253_vm3, %vm1245_vm5  ;;  %vm1361_vm5 = vcmp.eq.s32.totalorder %v4579_v30, %v1353_v49  ;;  %vm1369_vm3 = vcmp.eq.s32.totalorder %v4616_v14, %v1353_v49 }
 0x1b7   : > { %1622 = vmatprep.mubr.f32.mxu1 %v4238_v0  ;;  %3773 = vmatprep.subr.msk.bf16.mxu0 %vm5006_vm15, %v4240_v61  ;;  %vm3800_vm15 = vmpackc.low %vm1255_vm8, %vm1247_vm6  ;;  %vm1358_vm6 = vcmp.eq.s32.totalorder %v4579_v30, %v1341_v51  ;;  %vm1366_vm8 = vcmp.eq.s32.totalorder %v4616_v14, %v1341_v51 }
 0x1b8   : > { %3549 = vmatmul.mubr.msk.f32.gmra.mrb[24].mxu0 %vm5468_vm10, %v5030_v45  ;;  %3797 = vmatprep.subr.msk.bf16.mxu1 %vm5017_vm1, %v4240_v61  ;;  %vm5092_vm1 = vmpackc.low %vm1252_vm0, %vm1244_vm9  ;;  %vm1360_vm0 = vcmp.eq.s32.totalorder %v4579_v30, %v1349_v16 }
 0x1b9   : > { %3576 = vmatmul.mubr.msk.f32.gmra.mrb[24].mxu1 %vm5468_vm10, %v5030_v45  ;;  %3775 = vmatpush1.bf16.msk.msra.mxu0 %vm5036_vm14, %v4240_v61  ;;  %vm5104_vm14 = vmpackc.low %vm1254_vm13, %vm1246_vm11  ;;  %vm1368_vm10 = vcmp.eq.s32.totalorder %v4616_v14, %v1349_v16  ;;  %vm1383_vm11 = vcmp.eq.s32.totalorder %v4649_v38, %v1345_v44 }
 0x1ba   : > { %3799 = vmatpush1.bf16.msk.msra.mxu1 %vm5052_vm7, %v4240_v61  ;;  %3777 = vmatprep.subr.msk.bf16.mxu0 %vm3776_vm12, %v4240_v61  ;;  %vm3780_vm9 = vmpackc.low %vm1367_vm4, %vm1359_vm2  ;;  %vm1375_vm12 = vcmp.eq.s32.totalorder %v4645_v56, %v1345_v44  ;;  %vm1385_vm2 = vcmp.eq.s32.totalorder %v4649_v38, %v1353_v49 }
 0x1bb   : > { %3801 = vmatprep.subr.msk.bf16.mxu1 %vm3800_vm15, %v4240_v61  ;;  %1693 = vmatprep.mubr.f32.mxu0 %v4238_v0  ;;  %vm3804_vm7 = vmpackc.low %vm1369_vm3, %vm1361_vm5  ;;  %vm1377_vm15 = vcmp.eq.s32.totalorder %v4645_v56, %v1353_v49  ;;  %vm1374_vm3 = vcmp.eq.s32.totalorder %v4645_v56, %v1341_v51 }
 0x1bc   : > { %1776 = vmatprep.mubr.f32.mxu1 %v4238_v0  ;;  %vm3782_vm13 = vmpackc.low %vm1366_vm8, %vm1358_vm6  ;;  %vm1376_vm8 = vcmp.eq.s32.totalorder %v4645_v56, %v1349_v16 }
 0x1bd   : > { %3779 = vmatpush1.bf16.msk.msra.mxu0 %vm5092_vm1, %v4240_v61  ;;  %vm3806_vm4 = vmpackc.low %vm1368_vm10, %vm1360_vm0  ;;  %vm1382_vm1 = vcmp.eq.s32.totalorder %v4649_v38, %v1341_v51  ;;  %vm5547_vm0 = vcmask 785408  }
 0x1be   : > { %3803 = vmatpush1.bf16.msk.msra.mxu1 %vm5104_vm14, %v4240_v61  ;;  %3781 = vmatprep.subr.msk.bf16.mxu0 %vm3780_vm9, %v4240_v61  ;;  %vm3784_vm5 = vmpackc.low %vm1383_vm11, %vm1375_vm12  ;;  %vm1384_vm14 = vcmp.eq.s32.totalorder %v4649_v38, %v1349_v16 }
 0x1bf   : > { %3805 = vmatprep.subr.msk.bf16.mxu1 %vm3804_vm7, %v4240_v61  ;;  %vm3808_vm6 = vmpackc.low %vm1385_vm2, %vm1377_vm15  ;;  %vm1871_vm2 = vcmask 457728  }
 0x1c0   : > { %vm3786_vm9 = vmpackc.low %vm1382_vm1, %vm1374_vm3 }
 0x1c1   : > { %3783 = vmatpush1.bf16.msk.msra.mxu0 %vm3782_vm13, %v4240_v61  ;;  %vm3810_vm10 = vmpackc.low %vm1384_vm14, %vm1376_vm8 }
 0x1c2   : > { %3807 = vmatpush1.bf16.msk.msra.mxu1 %vm3806_vm4, %v4240_v61  ;;  %3785 = vmatprep.subr.msk.bf16.mxu0 %vm3784_vm5, %v4240_v61  ;;  %vm5548_vm7 = vmmov %vm5547_vm0  ;;  %vm5553_vm4 = vcmask 261120  }
 0x1c3   : > { %3809 = vmatprep.subr.msk.bf16.mxu1 %vm3808_vm6, %v4240_v61  ;;  %vm5549_vm12 = vmmov %vm5547_vm0 }
 0x1c4   : > { %vm5550_vm11 = vmmov %vm5547_vm0 }
 0x1c5   : > { %3787 = vmatpush1.bf16.msk.msra.mxu0 %vm3786_vm9, %v4240_v61  ;;  %vm5551_vm13 = vmmov %vm5547_vm0 }
 0x1c6   : > { %3811 = vmatpush1.bf16.msk.msra.mxu1 %vm3810_vm10, %v4240_v61  ;;  %vm5552_vm15 = vmmov %vm5547_vm0  ;;  %vm5561_vm10 = vcmask 130048  }
 0x1c7   : > { %vm5554_vm5 = vmmov %vm5553_vm4 }
 0x1c8   : > { %3601 = vmatmul.mubr.msk.f32.vlgmr.msra.gmra.mrb[26].mxu0 %vm5547_vm0, %v4924_v28  ;;  %vm5555_vm3 = vmmov %vm5553_vm4 }
 0x1c9   : > { %3628 = vmatmul.mubr.msk.f32.vlgmr.msra.gmra.mrb[26].mxu1 %vm5548_vm7, %v4924_v28  ;;  %1699 = vmatprep.mubr.f32.mxu0 %v4238_v0  ;;  %vm5556_vm1 = vmmov %vm5555_vm3 }
 0x1ca   : > { %1782 = vmatprep.mubr.f32.mxu1 %v4238_v0  ;;  %vm5557_vm6 = vmmov %vm5556_vm1 }
 0x1cb   : > { %vm5558_vm8 = vmmov %vm5556_vm1 }
 0x1cc   : > { %3602 = vmatmul.mubr.msk.f32.gmra.mrb[28].mxu0 %vm5549_vm12, %v4978_v37  ;;  %vm5559_vm14 = vmmov %vm5556_vm1 }
 0x1cd   : > { %3629 = vmatmul.mubr.msk.f32.gmra.mrb[28].mxu1 %vm5550_vm11, %v4978_v37  ;;  %1705 = vmatprep.mubr.f32.mxu0 %v4238_v0  ;;  %vm5560_vm9 = vmmov %vm5556_vm1  ;;  %vm3193_vm11 = vcmask 1040384  }
 0x1ce   : > { %1788 = vmatprep.mubr.f32.mxu1 %v4238_v0  ;;  %vm5562_vm0 = vmmov %vm5561_vm10 }
 0x1cf   : > { %vm5563_vm7 = vmmov %vm5562_vm0 }
 0x1d0   : > { %3603 = vmatmul.mubr.msk.f32.gmra.mrb[30].mxu0 %vm5551_vm13, %v5030_v45  ;;  %vm5564_vm12 = vmmov %vm5562_vm0 }
 0x1d1   : > { %3630 = vmatmul.mubr.msk.f32.gmra.mrb[30].mxu1 %vm5552_vm15, %v5030_v45  ;;  %1948 = vmatprep.mubr.f32.mxu0 %v4238_v0 }
 0x1d2   : > { %2037 = vmatprep.mubr.f32.mxu1 %v4238_v0 }
 0x25b   : > { %v830_v14 = vpop.f32.mrb[16].mxu0 }
 0x25c   : > { %v901_v56 = vpop.f32.mrb[16].mxu1  ;;  %v832_v38 = vpop.f32.mrb[17].mxu0  ;;  %v831_v2 = vadd.f32 %v830_v14, %v5163_v1 }
 0x25d   : > { %v903_v55 = vpop.f32.mrb[17].mxu1  ;;  %v902_v3 = vadd.f32 %v901_v56, %v5163_v1  ;;  %v833_v4 = vadd.f32 %v832_v38, %v5163_v1 }
 0x25e   : > { %v904_v58 = vadd.f32 %v903_v55, %v5163_v1  ;;  %v1048_v5 = vmax.f32 %v831_v2, 0.0 }
 0x25f   : > { %v1050_v6 = vmax.f32 %v902_v3, 0.0  ;;  %v1049_v7 = vmax.f32 %v833_v4, 0.0 }
 0x260   : > { %v1051_v9 = vmax.f32 %v904_v58, 0.0 }
 0x26b   : > { %v5155_v57 = vpop.f32.mrb[18].mxu0 }
 0x26c   : > { %v5157_v60 = vpop.f32.mrb[18].mxu1  ;;  %v5159_v61 = vpop.f32.mrb[19].mxu0 }
 0x26d   : > { %v5161_v62 = vpop.f32.mrb[19].mxu1 }
 0x283   : > { %v1529_v8 = vpop.f32.mrb[20].mxu0 }
 0x284   : > { %v1795_v10 = vmul.f32 %v1529_v8, %v1048_v5  ;;  %v1612_v11 = vpop.f32.mrb[20].mxu1  ;;  %v1531_v13 = vpop.f32.mrb[21].mxu0 }
 0x285   : > { %v1797_v15 = vmul.f32 %v1612_v11, %v1050_v6  ;;  %v1796_v19 = vmul.f32 %v1531_v13, %v1049_v7  ;;  %v1614_v20 = vpop.f32.mrb[21].mxu1 }
 0x286   : > { %v3814_v21 = vpack.c.bf16 %v1795_v10, %v1048_v5  ;;  %v1798_v22 = vmul.f32 %v1614_v20, %v1051_v9 }
 0x287   : > { %v3826_v23 = vpack.c.bf16 %v1797_v15, %v1050_v6  ;;  %v1535_v24 = vpop.f32.mrb[22].mxu0  ;;  %v3812_v25 = vpack.c.bf16 %v1796_v19, %v1049_v7 }
 0x288   : > { %v1803_v52 = vmul.f32 %v1535_v24, %v1048_v5  ;;  %v1811_v26 = vmul.f32 %v1535_v24, %v1529_v8  ;;  %v1618_v27 = vpop.f32.mrb[22].mxu1  ;;  %v1537_v28 = vpop.f32.mrb[23].mxu0  ;;  %v3824_v29 = vpack.c.bf16 %v1798_v22, %v1051_v9 }
 0x289   : > { %v1805_v31 = vmul.f32 %v1618_v27, %v1050_v6  ;;  %v1813_v32 = vmul.f32 %v1618_v27, %v1612_v11  ;;  %v1804_v33 = vmul.f32 %v1537_v28, %v1049_v7  ;;  %v1812_v34 = vmul.f32 %v1537_v28, %v1531_v13  ;;  %v1620_v35 = vpop.f32.mrb[23].mxu1  ;;  %3813 = vmatprep.subr.bf16.mxu0 %v3812_v25  ;;  %v5192_v25 = vld [vmem:[#allocation8 + $0x78] sm:$0xff] }
 0x28a   : > { %v3818_v36 = vpack.c.bf16 %v1811_v26, %v1803_v52  ;;  %v1806_v37 = vmul.f32 %v1620_v35, %v1051_v9  ;;  %v1814_v39 = vmul.f32 %v1620_v35, %v1614_v20  ;;  %3825 = vmatprep.subr.bf16.mxu1 %v3824_v29  ;;  %3815 = vmatpush1.bf16.msra.mxu0 %v3814_v21 }
 0x28b   : > { %v3830_v40 = vpack.c.bf16 %v1813_v32, %v1805_v31  ;;  %3827 = vmatpush1.bf16.msra.mxu1 %v3826_v23  ;;  %v1541_v41 = vpop.f32.mrb[24].mxu0  ;;  %v3816_v43 = vpack.c.bf16 %v1812_v34, %v1804_v33 }
 0x28c   : > { %v1819_v44 = vmul.f32 %v1541_v41, %v1048_v5  ;;  %v1827_v45 = vmul.f32 %v1541_v41, %v1529_v8  ;;  %v1835_v46 = vmul.f32 %v1541_v41, %v1535_v24  ;;  %v1624_v49 = vpop.f32.mrb[24].mxu1  ;;  %v1543_v50 = vpop.f32.mrb[25].mxu0  ;;  %v3828_v51 = vpack.c.bf16 %v1814_v39, %v1806_v37 }
 0x28d   : > { %v1821_v16 = vmul.f32 %v1624_v49, %v1050_v6  ;;  %v1829_v53 = vmul.f32 %v1624_v49, %v1612_v11  ;;  %v1837_v54 = vmul.f32 %v1624_v49, %v1618_v27  ;;  %v1820_v14 = vmul.f32 %v1543_v50, %v1049_v7  ;;  %v1626_v56 = vpop.f32.mrb[25].mxu1  ;;  %3817 = vmatprep.subr.bf16.mxu0 %v3816_v43  ;;  %v5169_v6 = vld [vmem:[#allocation8 + $0x68] sm:$0xff] }
 0x28e   : > { %v3822_v38 = vpack.c.bf16 %v1827_v45, %v1819_v44  ;;  %v1828_v55 = vmul.f32 %v1543_v50, %v1531_v13  ;;  %v1836_v2 = vmul.f32 %v1543_v50, %v1537_v28  ;;  %v1822_v3 = vmul.f32 %v1626_v56, %v1051_v9  ;;  %3829 = vmatprep.subr.bf16.mxu1 %v3828_v51 }
 0x28f   : > { %v3834_v4 = vpack.c.bf16 %v1829_v53, %v1821_v16  ;;  %v1830_v58 = vmul.f32 %v1626_v56, %v1614_v20  ;;  %v1838_v10 = vmul.f32 %v1626_v56, %v1620_v35  ;;  %3819 = vmatpush1.bf16.msra.mxu0 %v3818_v36  ;;  %3831 = vmatpush1.bf16.msra.mxu1 %v3830_v40 }
 0x290   : > { %v3820_v5 = vpack.c.bf16 %v1828_v55, %v1820_v14  ;;  %v973_v7 = vadd.f32 %v5155_v57, %v5163_v1  ;;  %v1044_v9 = vadd.f32 %v5157_v60, %v5163_v1  ;;  %v975_v11 = vadd.f32 %v5159_v61, %v5163_v1  ;;  %v5184_v57 = vld [vmem:[#allocation8 + $0x70] sm:$0xff] }
 0x291   : > { %v3832_v8 = vpack.c.bf16 %v1830_v58, %v1822_v3  ;;  %v1046_v13 = vadd.f32 %v5161_v62, %v5163_v1 }
 0x292   : > { %3821 = vmatprep.subr.bf16.mxu0 %v3820_v5  ;;  %v1052_v15 = vmax.f32 %v973_v7, 0.0  ;;  %v1054_v60 = vmax.f32 %v1044_v9, 0.0  ;;  %v1053_v61 = vmax.f32 %v975_v11, 0.0 }
 0x293   : > { %3833 = vmatprep.subr.bf16.mxu1 %v3832_v8  ;;  %3823 = vmatpush1.bf16.msra.mxu0 %v3822_v38  ;;  %v1055_v20 = vmax.f32 %v1046_v13, 0.0 }
 0x294   : > { %3835 = vmatpush1.bf16.msra.mxu1 %v3834_v4  ;;  %1896 = vmatprep.subr.mxu0 %v1836_v2 }
 0x295   : > { %1985 = vmatprep.subr.mxu1 %v1838_v10 }
 0x297   : > { %1897 = vmatpush1.msra.mxu0 %v1835_v46  ;;  %v1846_v46 = vld [vmem:[#allocation8 + $0x80] sm:$0xff] }
 0x298   : > { %1986 = vmatpush1.msra.mxu1 %v1837_v54  ;;  %3631 = vmatmul.mubr.msk.f32.vlgmr.msra.gmra.mrb[32].mxu0 %vm1871_vm2, %v5169_v6 }
 0x299   : > { %3635 = vmatmul.mubr.msk.f32.vlgmr.msra.gmra.mrb[32].mxu1 %vm1871_vm2, %v5169_v6  ;;  %1954 = vmatprep.mubr.f32.mxu0 %v4238_v0 }
 0x29a   : > { %2043 = vmatprep.mubr.f32.mxu1 %v4238_v0 }
 0x29b   : > { %v1695_v19 = vpop.f32.mrb[26].mxu0 }
 0x29c   : > { %v1799_v21 = vmul.f32 %v1695_v19, %v1052_v15  ;;  %v1778_v62 = vpop.f32.mrb[26].mxu1  ;;  %3632 = vmatmul.mubr.msk.f32.gmra.mrb[34].mxu0 %vm1871_vm2, %v5184_v57  ;;  %v1697_v1 = vpop.f32.mrb[27].mxu0 }
 0x29d   : > { %v1801_v22 = vmul.f32 %v1778_v62, %v1054_v60  ;;  %3636 = vmatmul.mubr.msk.f32.gmra.mrb[34].mxu1 %vm1871_vm2, %v5184_v57  ;;  %v1800_v23 = vmul.f32 %v1697_v1, %v1053_v61  ;;  %v1780_v24 = vpop.f32.mrb[27].mxu1  ;;  %1960 = vmatprep.mubr.f32.mxu0 %v4238_v0 }
 0x29e   : > { %v3838_v52 = vpack.c.bf16 %v1799_v21, %v1052_v15  ;;  %v1802_v26 = vmul.f32 %v1780_v24, %v1055_v20  ;;  %2049 = vmatprep.mubr.f32.mxu1 %v4238_v0 }
 0x29f   : > { %v3850_v27 = vpack.c.bf16 %v1801_v22, %v1054_v60  ;;  %v1701_v28 = vpop.f32.mrb[28].mxu0  ;;  %v3836_v29 = vpack.c.bf16 %v1800_v23, %v1053_v61 }
 0x2a0   : > { %v1807_v31 = vmul.f32 %v1701_v28, %v1052_v15  ;;  %v1815_v32 = vmul.f32 %v1701_v28, %v1695_v19  ;;  %v1784_v33 = vpop.f32.mrb[28].mxu1  ;;  %3633 = vmatmul.mubr.msk.f32.gmra.mrb[36].mxu0 %vm1871_vm2, %v5192_v25  ;;  %v1703_v34 = vpop.f32.mrb[29].mxu0  ;;  %v3848_v35 = vpack.c.bf16 %v1802_v26, %v1055_v20 }
 0x2a1   : > { %v1809_v36 = vmul.f32 %v1784_v33, %v1054_v60  ;;  %v1817_v37 = vmul.f32 %v1784_v33, %v1778_v62  ;;  %3637 = vmatmul.mubr.msk.f32.gmra.mrb[36].mxu1 %vm1871_vm2, %v5192_v25  ;;  %v1808_v39 = vmul.f32 %v1703_v34, %v1053_v61  ;;  %v1816_v40 = vmul.f32 %v1703_v34, %v1697_v1  ;;  %v1786_v41 = vpop.f32.mrb[29].mxu1 }
 0x2a2   : > { %v3842_v43 = vpack.c.bf16 %v1815_v32, %v1807_v31  ;;  %v1810_v44 = vmul.f32 %v1786_v41, %v1055_v20  ;;  %v1818_v45 = vmul.f32 %v1786_v41, %v1780_v24  ;;  %3837 = vmatprep.subr.bf16.mxu0 %v3836_v29  ;;  %3849 = vmatprep.subr.bf16.mxu1 %v3848_v35 }
 0x2a3   : > { %v3854_v49 = vpack.c.bf16 %v1817_v37, %v1809_v36  ;;  %1966 = vmatprep.mubr.f32.mxu0 %v4238_v0  ;;  %2055 = vmatprep.mubr.f32.mxu1 %v4238_v0  ;;  %v1707_v50 = vpop.f32.mrb[30].mxu0  ;;  %v3840_v51 = vpack.c.bf16 %v1816_v40, %v1808_v39 }
 0x2a4   : > { %3839 = vmatpush1.bf16.msra.mxu0 %v3838_v52  ;;  %3851 = vmatpush1.bf16.msra.mxu1 %v3850_v27  ;;  %v1823_v16 = vmul.f32 %v1707_v50, %v1052_v15  ;;  %v1831_v53 = vmul.f32 %v1707_v50, %v1695_v19  ;;  %v1839_v54 = vmul.f32 %v1707_v50, %v1701_v28  ;;  %v1790_v14 = vpop.f32.mrb[30].mxu1  ;;  %v1709_v56 = vpop.f32.mrb[31].mxu0 }
 0x2a5   : > { %v1825_v38 = vmul.f32 %v1790_v14, %v1054_v60  ;;  %v1833_v55 = vmul.f32 %v1790_v14, %v1778_v62  ;;  %v1841_v2 = vmul.f32 %v1790_v14, %v1784_v33  ;;  %3634 = vmatmul.mubr.msk.f32.gmra.mrb[38].mxu0 %vm1871_vm2, %v1846_v46  ;;  %3638 = vmatmul.mubr.msk.f32.gmra.mrb[38].mxu1 %vm1871_vm2, %v1846_v46  ;;  %v1792_v3 = vpop.f32.mrb[31].mxu1  ;;  %v5227_v19 = vpop.permute.xlu1 %1853 }
 0x2a6   : > { %v3846_v4 = vpack.c.bf16 %v1831_v53, %v1823_v16  ;;  %v1824_v58 = vmul.f32 %v1709_v56, %v1053_v61  ;;  %v1832_v10 = vmul.f32 %v1709_v56, %v1697_v1  ;;  %v1840_v5 = vmul.f32 %v1709_v56, %v1703_v34  ;;  %3841 = vmatprep.subr.bf16.mxu0 %v3840_v51  ;;  %v5230_v62 = vpop.permute.xlu0 %1858 }
 0x2a7   : > { %v3858_v8 = vpack.c.bf16 %v1833_v55, %v1825_v38  ;;  %v1826_v7 = vmul.f32 %v1792_v3, %v1055_v20  ;;  %v1834_v9 = vmul.f32 %v1792_v3, %v1780_v24  ;;  %v1842_v11 = vmul.f32 %v1792_v3, %v1786_v41  ;;  %2126 = vmatprep.mubr.f32.mxu0 %v4238_v0 }
 0x2a8   : > { %v3852_v13 = vpack.c.bf16 %v1818_v45, %v1810_v44  ;;  %3843 = vmatpush1.bf16.msra.mxu0 %v3842_v43  ;;  %v3844_v15 = vpack.c.bf16 %v1832_v10, %v1824_v58  ;;  %2215 = vmatprep.mubr.f32.mxu1 %v4238_v0 }
 0x2a9   : > { %v3856_v60 = vpack.c.bf16 %v1834_v9, %v1826_v7  ;;  %v5239_v51 = vpop.permute.xlu1 %1863 }
 0x2aa   : > { %3853 = vmatprep.subr.bf16.mxu1 %v3852_v13  ;;  %3845 = vmatprep.subr.bf16.mxu0 %v3844_v15  ;;  %v5241_v53 = vpop.permute.xlu0 %1868 }
 0x2ab   : > { %3855 = vmatpush1.bf16.msra.mxu1 %v3854_v49 }
 0x2ac   : > { %3857 = vmatprep.subr.bf16.mxu1 %v3856_v60  ;;  %3847 = vmatpush1.bf16.msra.mxu0 %v3846_v4 }
 0x2ad   : > { %2074 = vmatprep.subr.mxu0 %v1840_v5 }
 0x2af   : > { %3859 = vmatpush1.bf16.msra.mxu1 %v3858_v8 }
 0x2b0   : > { %2163 = vmatprep.subr.mxu1 %v1842_v11  ;;  %2075 = vmatpush1.msra.mxu0 %v1839_v54 }
 0x2b1   : > { %3639 = vmatmul.mubr.msk.f32.vlgmr.msra.gmra.mrb[40].mxu0 %vm1871_vm2, %v5169_v6 }
 0x2b2   : > { %2132 = vmatprep.mubr.f32.mxu0 %v4238_v0 }
 0x2b3   : > { %2164 = vmatpush1.msra.mxu1 %v1841_v2 }
 0x2b4   : > { %3643 = vmatmul.mubr.msk.f32.vlgmr.msra.gmra.mrb[40].mxu1 %vm1871_vm2, %v5169_v6 }
 0x2b5   : > { %2221 = vmatprep.mubr.f32.mxu1 %v4238_v0  ;;  %3640 = vmatmul.mubr.msk.f32.gmra.mrb[42].mxu0 %vm1871_vm2, %v5184_v57 }
 0x2b6   : > { %2138 = vmatprep.mubr.f32.mxu0 %v4238_v0 }
 0x2b8   : > { %3644 = vmatmul.mubr.msk.f32.gmra.mrb[42].mxu1 %vm1871_vm2, %v5184_v57 }
 0x2b9   : > { %2227 = vmatprep.mubr.f32.mxu1 %v4238_v0  ;;  %3641 = vmatmul.mubr.msk.f32.gmra.mrb[44].mxu0 %vm1871_vm2, %v5192_v25 }
 0x2ba   : > { %2144 = vmatprep.mubr.f32.mxu0 %v4238_v0 }
 0x2bc   : > { %3645 = vmatmul.mubr.msk.f32.gmra.mrb[44].mxu1 %vm1871_vm2, %v5192_v25 }
 0x2bd   : > { %2233 = vmatprep.mubr.f32.mxu1 %v4238_v0  ;;  %3642 = vmatmul.mubr.msk.f32.gmra.mrb[46].mxu0 %vm1871_vm2, %v1846_v46 }
 0x2be   : > { %2356 = vmatprep.mubr.f32.mxu0 %v4238_v0 }
 0x2c0   : > { %3646 = vmatmul.mubr.msk.f32.gmra.mrb[46].mxu1 %vm1871_vm2, %v1846_v46 }
 0x2c1   : > { %2433 = vmatprep.mubr.f32.mxu1 %v4238_v0 }
 0x36b   : > { %v1950_v6 = vpop.f32.mrb[32].mxu0 }
 0x36c   : > { %v2039_v57 = vpop.f32.mrb[32].mxu1  ;;  %v1952_v61 = vpop.f32.mrb[33].mxu0  ;;  %v1951_v21 = vadd.f32 %v1950_v6, %v5227_v19 }
 0x36d   : > { %v2041_v20 = vpop.f32.mrb[33].mxu1  ;;  %v2040_v1 = vadd.f32 %v2039_v57, %v5227_v19  ;;  %v1953_v22 = vadd.f32 %v1952_v61, %v5227_v19 }
 0x36e   : > { %v2042_v24 = vadd.f32 %v2041_v20, %v5227_v19  ;;  %v2240_v31 = vmax.f32 %v1951_v21, 0.0 }
 0x36f   : > { %v1956_v23 = vpop.f32.mrb[34].mxu0  ;;  %v2242_v34 = vmax.f32 %v2040_v1, 0.0  ;;  %v2241_v35 = vmax.f32 %v1953_v22, 0.0  ;;  %v5251_v22 = vld [vmem:[#allocation8 + $0xa8] sm:$0xff] }
 0x370   : > { %v1957_v25 = vadd.f32 %v1956_v23, %v5230_v62  ;;  %v2045_v52 = vpop.f32.mrb[34].mxu1  ;;  %v1958_v26 = vpop.f32.mrb[35].mxu0  ;;  %v2243_v40 = vmax.f32 %v2042_v24, 0.0 }
 0x371   : > { %v2046_v27 = vadd.f32 %v2045_v52, %v5230_v62  ;;  %v1959_v28 = vadd.f32 %v1958_v26, %v5230_v62  ;;  %v2047_v29 = vpop.f32.mrb[35].mxu1 }
 0x372   : > { %v2248_v32 = vmax.f32 %v1957_v25, 0.0  ;;  %v2048_v33 = vadd.f32 %v2047_v29, %v5230_v62  ;;  %v5259_v25 = vld [vmem:[#allocation8 + $0xb0] sm:$0xff] }
 0x373   : > { %v2250_v36 = vmax.f32 %v2046_v27, 0.0  ;;  %v2249_v37 = vmax.f32 %v1959_v28, 0.0  ;;  %v1962_v39 = vpop.f32.mrb[36].mxu0 }
 0x374   : > { %v3862_v41 = vpack.c.bf16 %v2248_v32, %v2240_v31  ;;  %v2251_v43 = vmax.f32 %v2048_v33, 0.0  ;;  %v2051_v44 = vpop.f32.mrb[36].mxu1  ;;  %v1964_v45 = vpop.f32.mrb[37].mxu0  ;;  %v1963_v54 = vadd.f32 %v1962_v39, %v5239_v51 }
 0x375   : > { %v3870_v46 = vpack.c.bf16 %v2250_v36, %v2242_v34  ;;  %v3860_v49 = vpack.c.bf16 %v2249_v37, %v2241_v35  ;;  %v2053_v50 = vpop.f32.mrb[37].mxu1  ;;  %v2052_v14 = vadd.f32 %v2051_v44, %v5239_v51  ;;  %v1965_v56 = vadd.f32 %v1964_v45, %v5239_v51 }
 0x376   : > { %v3868_v16 = vpack.c.bf16 %v2251_v43, %v2243_v40  ;;  %v2054_v38 = vadd.f32 %v2053_v50, %v5239_v51  ;;  %v2256_v7 = vmax.f32 %v1963_v54, 0.0 }
 0x377   : > { %3861 = vmatprep.subr.bf16.mxu0 %v3860_v49  ;;  %v2258_v9 = vmax.f32 %v2052_v14, 0.0  ;;  %v2257_v15 = vmax.f32 %v1965_v56, 0.0 }
 0x378   : > { %v1968_v55 = vpop.f32.mrb[38].mxu0  ;;  %v2057_v2 = vpop.f32.mrb[38].mxu1  ;;  %3869 = vmatprep.subr.bf16.mxu1 %v3868_v16  ;;  %3863 = vmatpush1.bf16.msra.mxu0 %v3862_v41  ;;  %v2259_v60 = vmax.f32 %v2054_v38, 0.0 }
 0x379   : > { %v1969_v3 = vadd.f32 %v1968_v55, %v5241_v53  ;;  %v2058_v4 = vadd.f32 %v2057_v2, %v5241_v53  ;;  %v1970_v58 = vpop.f32.mrb[39].mxu0  ;;  %v2059_v10 = vpop.f32.mrb[39].mxu1  ;;  %3871 = vmatpush1.bf16.msra.mxu1 %v3870_v46 }
 0x37a   : > { %v1971_v5 = vadd.f32 %v1970_v58, %v5241_v53  ;;  %v2060_v8 = vadd.f32 %v2059_v10, %v5241_v53 }
 0x37b   : > { %v2264_v11 = vmax.f32 %v1969_v3, 0.0  ;;  %v2266_v13 = vmax.f32 %v2058_v4, 0.0 }
 0x37c   : > { %v2265_v6 = vmax.f32 %v1971_v5, 0.0  ;;  %v2267_v57 = vmax.f32 %v2060_v8, 0.0 }
 0x37d   : > { %v3866_v61 = vpack.c.bf16 %v2264_v11, %v2256_v7  ;;  %v3874_v20 = vpack.c.bf16 %v2266_v13, %v2258_v9 }
 0x37e   : > { %v3864_v21 = vpack.c.bf16 %v2265_v6, %v2257_v15  ;;  %v3872_v1 = vpack.c.bf16 %v2267_v57, %v2259_v60 }
 0x380   : > { %3865 = vmatprep.subr.bf16.mxu0 %v3864_v21  ;;  %3873 = vmatprep.subr.bf16.mxu1 %v3872_v1 }
 0x381   : > { %3867 = vmatpush1.bf16.msra.mxu0 %v3866_v61  ;;  %3875 = vmatpush1.bf16.msra.mxu1 %v3874_v20 }
 0x384   : > { %v2128_v23 = vpop.f32.mrb[40].mxu0  ;;  %3647 = vmatmul.mubr.msk.f32.vlgmr.msra.gmra.mrb[48].mxu0 %vm5553_vm4, %v5251_v22  ;;  %3649 = vmatmul.mubr.msk.f32.vlgmr.msra.gmra.mrb[48].mxu1 %vm5554_vm5, %v5251_v22 }
 0x385   : > { %v2130_v24 = vpop.f32.mrb[41].mxu0  ;;  %2362 = vmatprep.mubr.f32.mxu0 %v4238_v0  ;;  %2439 = vmatprep.mubr.f32.mxu1 %v4238_v0  ;;  %v2129_v52 = vadd.f32 %v2128_v23, %v5227_v19 }
 0x386   : > { %v2131_v27 = vadd.f32 %v2130_v24, %v5227_v19 }
 0x387   : > { %v2217_v26 = vpop.f32.mrb[40].mxu1  ;;  %v2244_v35 = vmax.f32 %v2129_v52, 0.0 }
 0x388   : > { %v2219_v28 = vpop.f32.mrb[41].mxu1  ;;  %v2134_v29 = vpop.f32.mrb[42].mxu0  ;;  %3648 = vmatmul.mubr.msk.f32.gmra.mrb[50].mxu0 %vm5555_vm3, %v5259_v25  ;;  %3650 = vmatmul.mubr.msk.f32.gmra.mrb[50].mxu1 %vm5556_vm1, %v5259_v25  ;;  %v2218_v33 = vadd.f32 %v2217_v26, %v5227_v19  ;;  %v2245_v40 = vmax.f32 %v2131_v27, 0.0 }
 0x389   : > { %v2135_v31 = vadd.f32 %v2134_v29, %v5230_v62  ;;  %v2136_v32 = vpop.f32.mrb[43].mxu0  ;;  %2510 = vmatprep.mubr.f32.mxu0 %v4238_v0  ;;  %2587 = vmatprep.mubr.f32.mxu1 %v4238_v0  ;;  %v2220_v36 = vadd.f32 %v2219_v28, %v5227_v19 }
 0x38a   : > { %v2137_v34 = vadd.f32 %v2136_v32, %v5230_v62  ;;  %v2246_v16 = vmax.f32 %v2218_v33, 0.0  ;;  %v2279_v32 = vpop.permute.xlu1 %2278  ;;  %v2284_v33 = vpop.permute.xlu0 %2283 }
 0x38b   : > { %v2252_v37 = vmax.f32 %v2135_v31, 0.0  ;;  %v2223_v39 = vpop.f32.mrb[42].mxu1  ;;  %v2247_v56 = vmax.f32 %v2220_v36, 0.0 }
 0x38c   : > { %v2224_v41 = vadd.f32 %v2223_v39, %v5230_v62  ;;  %v2253_v43 = vmax.f32 %v2137_v34, 0.0  ;;  %v2225_v44 = vpop.f32.mrb[43].mxu1  ;;  %v2140_v45 = vpop.f32.mrb[44].mxu0 }
 0x38d   : > { %v3878_v46 = vpack.c.bf16 %v2252_v37, %v2244_v35  ;;  %v2226_v49 = vadd.f32 %v2225_v44, %v5230_v62  ;;  %v2142_v50 = vpop.f32.mrb[45].mxu0  ;;  %v2141_v55 = vadd.f32 %v2140_v45, %v5239_v51 }
 0x38e   : > { %v2254_v54 = vmax.f32 %v2224_v41, 0.0  ;;  %v3876_v14 = vpack.c.bf16 %v2253_v43, %v2245_v40  ;;  %v2143_v3 = vadd.f32 %v2142_v50, %v5239_v51 }
 0x38f   : > { %v2255_v38 = vmax.f32 %v2226_v49, 0.0  ;;  %v2229_v19 = vpop.f32.mrb[44].mxu1  ;;  %v2260_v9 = vmax.f32 %v2141_v55, 0.0 }
 0x390   : > { %v3886_v2 = vpack.c.bf16 %v2254_v54, %v2246_v16  ;;  %v2231_v4 = vpop.f32.mrb[45].mxu1  ;;  %v2146_v58 = vpop.f32.mrb[46].mxu0  ;;  %3877 = vmatprep.subr.bf16.mxu0 %v3876_v14  ;;  %v2230_v62 = vadd.f32 %v2229_v19, %v5239_v51  ;;  %v2261_v60 = vmax.f32 %v2143_v3, 0.0 }
 0x391   : > { %v3884_v10 = vpack.c.bf16 %v2255_v38, %v2247_v56  ;;  %v2147_v5 = vadd.f32 %v2146_v58, %v5241_v53  ;;  %v2148_v8 = vpop.f32.mrb[47].mxu0  ;;  %3879 = vmatpush1.bf16.msra.mxu0 %v3878_v46  ;;  %v2232_v11 = vadd.f32 %v2231_v4, %v5239_v51  ;;  %v2616_v4 = vld [vmem:[#allocation8 + $0xc8] sm:$0x1] }
 0x392   : > { %v2149_v7 = vadd.f32 %v2148_v8, %v5241_v53  ;;  %v2262_v1 = vmax.f32 %v2230_v62, 0.0 }
 0x393   : > { %v2268_v13 = vmax.f32 %v2147_v5, 0.0  ;;  %v2235_v15 = vpop.f32.mrb[46].mxu1  ;;  %3885 = vmatprep.subr.bf16.mxu1 %v3884_v10  ;;  %v2263_v52 = vmax.f32 %v2232_v11, 0.0 }
 0x394   : > { %v2236_v6 = vadd.f32 %v2235_v15, %v5241_v53  ;;  %v2269_v57 = vmax.f32 %v2149_v7, 0.0  ;;  %v2237_v61 = vpop.f32.mrb[47].mxu1  ;;  %3887 = vmatpush1.bf16.msra.mxu1 %v3886_v2 }
 0x395   : > { %v3882_v20 = vpack.c.bf16 %v2268_v13, %v2260_v9  ;;  %v2238_v21 = vadd.f32 %v2237_v61, %v5241_v53 }
 0x396   : > { %v2270_v23 = vmax.f32 %v2236_v6, 0.0  ;;  %v3880_v24 = vpack.c.bf16 %v2269_v57, %v2261_v60 }
 0x397   : > { %v2271_v26 = vmax.f32 %v2238_v21, 0.0 }
 0x398   : > { %v3890_v27 = vpack.c.bf16 %v2270_v23, %v2262_v1  ;;  %3881 = vmatprep.subr.bf16.mxu0 %v3880_v24 }
 0x399   : > { %v3888_v51 = vpack.c.bf16 %v2271_v26, %v2263_v52  ;;  %3883 = vmatpush1.bf16.msra.mxu0 %v3882_v20 }
 0x39b   : > { %3889 = vmatprep.subr.bf16.mxu1 %v3888_v51 }
 0x39c   : > { %3891 = vmatpush1.bf16.msra.mxu1 %v3890_v27  ;;  %3651 = vmatmul.mubr.msk.f32.vlgmr.msra.gmra.mrb[52].mxu0 %vm5557_vm6, %v5251_v22 }
 0x39d   : > { %2516 = vmatprep.mubr.f32.mxu0 %v4238_v0 }
 0x39f   : > { %3653 = vmatmul.mubr.msk.f32.vlgmr.msra.gmra.mrb[52].mxu1 %vm5558_vm8, %v5251_v22 }
 0x3a0   : > { %2593 = vmatprep.mubr.f32.mxu1 %v4238_v0  ;;  %3652 = vmatmul.mubr.msk.f32.gmra.mrb[54].mxu0 %vm5559_vm14, %v5259_v25 }
 0x3a1   : > { %2690 = vmatprep.mubr.f32.mxu0 %v4238_v0 }
 0x3a3   : > { %3654 = vmatmul.mubr.msk.f32.gmra.mrb[54].mxu1 %vm5560_vm9, %v5259_v25 }
 0x3a4   : > { %2761 = vmatprep.mubr.f32.mxu1 %v4238_v0 }
 0x457   : > { %v2358_v53 = vpop.f32.mrb[48].mxu0  ;;  %v2435_v28 = vpop.f32.mrb[48].mxu1 }
 0x458   : > { %v2360_v29 = vpop.f32.mrb[49].mxu0  ;;  %v2437_v31 = vpop.f32.mrb[49].mxu1  ;;  %v2359_v34 = vadd.f32 %v2358_v53, %v2279_v32  ;;  %v2436_v22 = vadd.f32 %v2435_v28, %v2279_v32 }
 0x459   : > { %v2361_v35 = vadd.f32 %v2360_v29, %v2279_v32  ;;  %v2438_v36 = vadd.f32 %v2437_v31, %v2279_v32 }
 0x45a   : > { %v2600_v46 = vmax.f32 %v2359_v34, 0.0  ;;  %v2602_v49 = vmax.f32 %v2436_v22, 0.0 }
 0x45b   : > { %v2364_v37 = vpop.f32.mrb[50].mxu0  ;;  %v2441_v39 = vpop.f32.mrb[50].mxu1  ;;  %v2601_v54 = vmax.f32 %v2361_v35, 0.0  ;;  %v2603_v14 = vmax.f32 %v2438_v36, 0.0 }
 0x45c   : > { %v2365_v40 = vadd.f32 %v2364_v37, %v2284_v33  ;;  %v2442_v41 = vadd.f32 %v2441_v39, %v2284_v33  ;;  %v2366_v43 = vpop.f32.mrb[51].mxu0  ;;  %v2443_v44 = vpop.f32.mrb[51].mxu1 }
 0x45d   : > { %v2367_v45 = vadd.f32 %v2366_v43, %v2284_v33  ;;  %v2444_v25 = vadd.f32 %v2443_v44, %v2284_v33 }
 0x45e   : > { %v2608_v50 = vmax.f32 %v2365_v40, 0.0  ;;  %v2610_v16 = vmax.f32 %v2442_v41, 0.0 }
 0x45f   : > { %v2609_v56 = vmax.f32 %v2367_v45, 0.0  ;;  %v2611_v38 = vmax.f32 %v2444_v25, 0.0 }
 0x460   : > { %v3894_v55 = vpack.c.bf16 %v2608_v50, %v2600_v46  ;;  %v3898_v19 = vpack.c.bf16 %v2610_v16, %v2602_v49 }
 0x461   : > { %v3892_v2 = vpack.c.bf16 %v2609_v56, %v2601_v54  ;;  %v3896_v3 = vpack.c.bf16 %v2611_v38, %v2603_v14 }
 0x463   : > { %3893 = vmatprep.subr.bf16.mxu0 %v3892_v2  ;;  %3897 = vmatprep.subr.bf16.mxu1 %v3896_v3 }
 0x464   : > { %3895 = vmatpush1.bf16.msra.mxu0 %v3894_v55  ;;  %3899 = vmatpush1.bf16.msra.mxu1 %v3898_v19 }
 0x467   : > { %3655 = vmatmul.mubr.msk.f32.vlgmr.msra.gmra.mrb[56].mxu0 %vm5561_vm10, %v2616_v4  ;;  %3656 = vmatmul.mubr.msk.f32.vlgmr.msra.gmra.mrb[56].mxu1 %vm5562_vm0, %v2616_v4 }
 0x468   : > { %2832 = vmatprep.mubr.f32.mxu0 %v4238_v0  ;;  %2903 = vmatprep.mubr.f32.mxu1 %v4238_v0 }
 0x46f   : > { %v2512_v58 = vpop.f32.mrb[52].mxu0 }
 0x470   : > { %v2514_v10 = vpop.f32.mrb[53].mxu0  ;;  %v2513_v5 = vadd.f32 %v2512_v58, %v2279_v32 }
 0x471   : > { %v2515_v62 = vadd.f32 %v2514_v10, %v2279_v32 }
 0x472   : > { %v2589_v8 = vpop.f32.mrb[52].mxu1  ;;  %v2604_v6 = vmax.f32 %v2513_v5, 0.0 }
 0x473   : > { %v2591_v7 = vpop.f32.mrb[53].mxu1  ;;  %v2518_v9 = vpop.f32.mrb[54].mxu0  ;;  %v2590_v15 = vadd.f32 %v2589_v8, %v2279_v32  ;;  %v2605_v21 = vmax.f32 %v2515_v62, 0.0 }
 0x474   : > { %v2519_v11 = vadd.f32 %v2518_v9, %v2284_v33  ;;  %v2520_v13 = vpop.f32.mrb[55].mxu0  ;;  %v2592_v57 = vadd.f32 %v2591_v7, %v2279_v32  ;;  %v2621_v32 = vpop.permute.xlu1 %2620 }
 0x475   : > { %v2521_v60 = vadd.f32 %v2520_v13, %v2284_v33  ;;  %v2606_v26 = vmax.f32 %v2590_v15, 0.0  ;;  %v4241_v13 = vmov 1966171168  }
 0x476   : > { %v2612_v61 = vmax.f32 %v2519_v11, 0.0  ;;  %v2595_v20 = vpop.f32.mrb[54].mxu1  ;;  %v2607_v53 = vmax.f32 %v2592_v57, 0.0  ;;  %v3044_v15 = vunpack.c.l.s4 %v4241_v13 }
 0x477   : > { %v2596_v1 = vadd.f32 %v2595_v20, %v2284_v33  ;;  %v2613_v23 = vmax.f32 %v2521_v60, 0.0  ;;  %v2597_v24 = vpop.f32.mrb[55].mxu1 }
 0x478   : > { %v3902_v0 = vpack.c.bf16 %v2612_v61, %v2604_v6  ;;  %v2598_v52 = vadd.f32 %v2597_v24, %v2284_v33 }
 0x479   : > { %v2614_v27 = vmax.f32 %v2596_v1, 0.0  ;;  %v3900_v51 = vpack.c.bf16 %v2613_v23, %v2605_v21 }
 0x47a   : > { %v2615_v28 = vmax.f32 %v2598_v52, 0.0  ;;  %v3045_v52 = vunpack.c.0.s8 %v3044_v15 }
 0x47b   : > { %v3906_v29 = vpack.c.bf16 %v2614_v27, %v2606_v26  ;;  %3901 = vmatprep.subr.bf16.mxu0 %v3900_v51 }
 0x47c   : > { %v3904_v31 = vpack.c.bf16 %v2615_v28, %v2607_v53  ;;  %3903 = vmatpush1.bf16.msra.mxu0 %v3902_v0 }
 0x47e   : > { %3905 = vmatprep.subr.bf16.mxu1 %v3904_v31 }
 0x47f   : > { %3907 = vmatpush1.bf16.msra.mxu1 %v3906_v29  ;;  %3657 = vmatmul.mubr.msk.f32.vlgmr.msra.gmra.mrb[58].mxu0 %vm5563_vm7, %v2616_v4 }
 0x482   : > { %3658 = vmatmul.mubr.msk.f32.vlgmr.msra.gmra.mrb[58].mxu1 %vm5564_vm12, %v2616_v4 }
 0x53a   : > { %v2692_v34 = vpop.f32.mrb[56].mxu0  ;;  %v2763_v22 = vpop.f32.mrb[56].mxu1 }
 0x53b   : > { %v5301_v35 = vadd.f32 %v2692_v34, %v2621_v32  ;;  %v5303_v33 = vadd.f32 %v2763_v22, %v2621_v32  ;;  %v2694_v36 = vpop.f32.mrb[57].mxu0  ;;  %v2765_v37 = vpop.f32.mrb[57].mxu1 }
 0x53c   : > { %v5305_v39 = vadd.f32 %v2694_v36, %v2621_v32  ;;  %v5307_v40 = vadd.f32 %v2765_v37, %v2621_v32 }
 0x53d   : > { %v2918_v41 = vand.u32 2147483647, %v5301_v35  ;;  %v2920_v43 = vand.u32 2147483647, %v5303_v33  ;;  %v2910_v53 = vmax.f32 %v5301_v35, 0.0 }
 0x53e   : > { %v2919_v44 = vand.u32 2147483647, %v5305_v39  ;;  %v2921_v45 = vand.u32 2147483647, %v5307_v40 }
 0x53f   : > { %v2926_v25 = vsub.f32 0.0, %v2918_v41  ;;  %v2928_v46 = vsub.f32 0.0, %v2920_v43  ;;  %v2911_v41 = vmax.f32 %v5305_v39, 0.0 }
 0x540   : > { %v2927_v49 = vsub.f32 0.0, %v2919_v44  ;;  %v2929_v50 = vsub.f32 0.0, %v2921_v45 }
 0x541   : > { %v2934_v16 = vmul.f32 1.442695, %v2926_v25  ;;  %v2938_v54 = vmul.f32 1.442695, %v2928_v46  ;;  %v2913_v25 = vmax.f32 %v5307_v40, 0.0 }
 0x542   : > { %v2936_v14 = vmul.f32 1.442695, %v2927_v49  ;;  %v2940_v56 = vmul.f32 1.442695, %v2929_v50 }
 0x543   : > { %3987 = vpow2.f32 %v2934_v16 }
 0x544   : > { %3989 = vpow2.f32 %v2938_v54 }
 0x545   : > { %3991 = vpow2.f32 %v2936_v14 }
 0x546   : > { %3993 = vpow2.f32 %v2940_v56 }
 0x54d   : > { %v3988_v38 = vpop.eup %3987 }
 0x54e   : > { %v3990_v55 = vpop.eup %3989  ;;  %v2950_v19 = vadd.f32 1.0, %v3988_v38 }
 0x54f   : > { %v3992_v2 = vpop.eup %3991  ;;  %v2952_v3 = vadd.f32 1.0, %v3990_v55 }
 0x550   : > { %v3994_v4 = vpop.eup %3993  ;;  %3995 = vlog2.f32 %v2950_v19  ;;  %v2951_v58 = vadd.f32 1.0, %v3992_v2 }
 0x551   : > { %3997 = vlog2.f32 %v2952_v3  ;;  %v2953_v10 = vadd.f32 1.0, %v3994_v4  ;;  %v5342_v4 = vsub.s32 %v3045_v52, %v4579_v30 }
 0x552   : > { %3999 = vlog2.f32 %v2951_v58  ;;  %v2834_v5 = vpop.f32.mrb[58].mxu0 }
 0x553   : > { %4001 = vlog2.f32 %v2953_v10  ;;  %v5313_v8 = vadd.f32 %v2834_v5, %v2621_v32  ;;  %v2836_v62 = vpop.f32.mrb[59].mxu0 }
 0x554   : > { %v5315_v7 = vadd.f32 %v2836_v62, %v2621_v32 }
 0x555   : > { %v2922_v9 = vand.u32 2147483647, %v5313_v8  ;;  %v2905_v11 = vpop.f32.mrb[58].mxu1 }
 0x556   : > { %v5318_v60 = vadd.f32 %v2905_v11, %v2621_v32  ;;  %v2923_v6 = vand.u32 2147483647, %v5315_v7  ;;  %v2907_v57 = vpop.f32.mrb[59].mxu1 }
 0x557   : > { %v2930_v61 = vsub.f32 0.0, %v2922_v9  ;;  %v5321_v20 = vadd.f32 %v2907_v57, %v2621_v32  ;;  %v2912_v32 = vmax.f32 %v5303_v33, 0.0 }
 0x558   : > { %v2924_v21 = vand.u32 2147483647, %v5318_v60  ;;  %v2931_v1 = vsub.f32 0.0, %v2923_v6 }
 0x559   : > { %v2942_v23 = vmul.f32 1.442695, %v2930_v61  ;;  %v2925_v24 = vand.u32 2147483647, %v5321_v20 }
 0x55a   : > { %v3996_v0 = vpop.eup %3995  ;;  %v2932_v26 = vsub.f32 0.0, %v2924_v21  ;;  %v2944_v27 = vmul.f32 1.442695, %v2931_v1 }
 0x55b   : > { %v3998_v51 = vpop.eup %3997  ;;  %v2959_v28 = vmul.f32 0.6931472, %v3996_v0  ;;  %4003 = vpow2.f32 %v2942_v23  ;;  %v2933_v29 = vsub.f32 0.0, %v2925_v24 }
 0x55c   : > { %v4000_v31 = vpop.eup %3999  ;;  %v2963_v34 = vmul.f32 0.6931472, %v3998_v51  ;;  %v2946_v22 = vmul.f32 1.442695, %v2932_v26  ;;  %4005 = vpow2.f32 %v2944_v27 }
 0x55d   : > { %v4002_v36 = vpop.eup %4001  ;;  %v2974_v37 = vadd.f32 %v2959_v28, %v2910_v53  ;;  %v2961_v43 = vmul.f32 0.6931472, %v4000_v31  ;;  %v2948_v44 = vmul.f32 1.442695, %v2933_v29  ;;  %v2914_v31 = vmax.f32 %v5313_v8, 0.0 }
 0x55e   : > { %v2976_v45 = vadd.f32 %v2963_v34, %v2912_v32  ;;  %v2965_v46 = vmul.f32 0.6931472, %v4002_v36  ;;  %4007 = vpow2.f32 %v2946_v22  ;;  %v2915_v34 = vmax.f32 %v5315_v7, 0.0 }
 0x55f   : > { %v5330_v49 = vsub.f32 %v5301_v35, %v2974_v37  ;;  %v3014_v50 = vsub.f32 0.0, %v2974_v37  ;;  %v2975_v16 = vadd.f32 %v2961_v43, %v2911_v41  ;;  %4009 = vpow2.f32 %v2948_v44 }
 0x560   : > { %v5333_v54 = vsub.f32 %v5303_v33, %v2976_v45  ;;  %v3016_v14 = vsub.f32 0.0, %v2976_v45  ;;  %v2977_v56 = vadd.f32 %v2965_v46, %v2913_v25  ;;  %v2916_v43 = vmax.f32 %v5318_v60, 0.0 }
 0x561   : > { %v3006_v38 = vmax.f32 %v5330_v49, -100.0  ;;  %v5337_v55 = vsub.f32 %v5305_v39, %v2975_v16  ;;  %v3022_v19 = vmax.f32 %v3014_v50, -100.0  ;;  %v3015_v2 = vsub.f32 0.0, %v2975_v16 }
 0x562   : > { %v3008_v3 = vmax.f32 %v5333_v54, -100.0  ;;  %v5345_v58 = vsub.f32 %v5307_v40, %v2977_v56  ;;  %v3024_v33 = vmax.f32 %v3016_v14, -100.0  ;;  %v3017_v5 = vsub.f32 0.0, %v2977_v56 }
 0x563   : > { %v3007_v35 = vmax.f32 %v5337_v55, -100.0  ;;  %v3023_v10 = vmax.f32 %v3015_v2, -100.0  ;;  %v2917_v50 = vmax.f32 %v5321_v20, 0.0 }
 0x564   : > { %v3009_v39 = vmax.f32 %v5345_v58, -100.0  ;;  %v3025_v15 = vmax.f32 %v3017_v5, -100.0 }
 0x565   : > { %v4004_v62 = vpop.eup %4003  ;;  %v3039_v9 = vcombine.low %v3006_v38, %v3007_v35  ;;  %v3099_v13 = vcombine.low %v3022_v19, %v3023_v10 }
 0x566   : > { %v4006_v11 = vpop.eup %4005  ;;  %v2954_v6 = vadd.f32 1.0, %v4004_v62  ;;  %v3040_v61 = vcombine.low %v3008_v3, %v3009_v39  ;;  %v3100_v40 = vcombine.low %v3024_v33, %v3025_v15 }
 0x567   : > { %v3049_v57 = vrot.slane %v3039_v9, %v5342_v4  ;;  %v2955_v21 = vadd.f32 1.0, %v4006_v11  ;;  %v5350_v23 = vrot.slane %v3099_v13, %v5342_v4  ;;  %v2990_v11 = vmul.f32 1.442695, %v5330_v49 }
 0x568   : > { %v4008_v1 = vpop.eup %4007  ;;  %4011 = vlog2.f32 %v2954_v6  ;;  %v3056_v0 = vrot.slane %v3040_v61, %v5342_v4  ;;  %v5354_v26 = vrot.slane %v3100_v40, %v5342_v4  ;;  %v2992_v61 = vmul.f32 1.442695, %v5337_v55 }
 0x569   : > { %v4010_v24 = vpop.eup %4009  ;;  %v2956_v52 = vadd.f32 1.0, %v4008_v1  ;;  %4013 = vlog2.f32 %v2955_v21  ;;  %v2996_v1 = vmul.f32 1.442695, %v5345_v58 }
 0x56a   : > { %v2957_v27 = vadd.f32 1.0, %v4010_v24  ;;  %v5356_v51 = vcombine.low %v3049_v57, %v3056_v0  ;;  %v3131_v53 = vcombine.low %v5350_v23, %v5354_v26 }
 0x56b   : > { %4015 = vlog2.f32 %v2956_v52  ;;  %v3030_v52 = vld [vmem:[%s4499_s24] sm:$0xff] }
 0x56c   : > { %4017 = vlog2.f32 %v2957_v27  ;;  %v3079_v58 = vrot.slane %v5356_v51, %v5342_v4 }
 0x56d   : > { %4019 = vpow2.f32 %v2990_v11 }
 0x572   : > { %v4012_v28 = vpop.eup %4011 }
 0x573   : > { %v4014_v29 = vpop.eup %4013  ;;  %v2967_v32 = vmul.f32 0.6931472, %v4012_v28 }
 0x574   : > { %v2969_v22 = vmul.f32 0.6931472, %v4014_v29  ;;  %v3139_v29 = vrot.slane %v3131_v53, %v5342_v4 }
 0x575   : > { %v4016_v36 = vpop.eup %4015  ;;  %v2978_v37 = vadd.f32 %v2967_v32, %v2914_v31  ;;  %v3090_v31 = vsub.f32 1.0, %v3030_v52 }
 0x576   : > { %v4018_v41 = vpop.eup %4017  ;;  %v2971_v44 = vmul.f32 0.6931472, %v4016_v36  ;;  %v2979_v45 = vadd.f32 %v2969_v22, %v2915_v34  ;;  %v4242_v22 = vmov 1983009808  }
 0x577   : > { %v2986_v25 = vsub.f32 %v5313_v8, %v2978_v37  ;;  %v3018_v46 = vsub.f32 0.0, %v2978_v37  ;;  %v2973_v16 = vmul.f32 0.6931472, %v4018_v41  ;;  %v3213_v36 = vunpack.c.l.s4 %v4242_v22 }
 0x578   : > { %v2980_v14 = vadd.f32 %v2971_v44, %v2916_v43  ;;  %v2987_v56 = vsub.f32 %v5315_v7, %v2979_v45  ;;  %v3019_v38 = vsub.f32 0.0, %v2979_v45  ;;  %v2994_v7 = vmul.f32 1.442695, %v5333_v54  ;;  %v4020_v44 = vpop.eup %4019 }
 0x579   : > { %v3010_v19 = vmax.f32 %v2986_v25, -100.0  ;;  %v3026_v2 = vmax.f32 %v3018_v46, -100.0  ;;  %v2981_v3 = vadd.f32 %v2973_v16, %v2917_v50  ;;  %v2998_v40 = vmul.f32 1.442695, %v2986_v25 }
 0x57a   : > { %v2988_v35 = vsub.f32 %v5318_v60, %v2980_v14  ;;  %v3020_v33 = vsub.f32 0.0, %v2980_v14  ;;  %v3011_v10 = vmax.f32 %v2987_v56, -100.0  ;;  %v3027_v5 = vmax.f32 %v3019_v38, -100.0 }
 0x57b   : > { %v2989_v62 = vsub.f32 %v5321_v20, %v2981_v3  ;;  %v3021_v9 = vsub.f32 0.0, %v2981_v3  ;;  %4021 = vpow2.f32 %v2994_v7  ;;  %v3000_v24 = vmul.f32 1.442695, %v2987_v56 }
 0x57c   : > { %v3012_v8 = vmax.f32 %v2988_v35, -100.0  ;;  %v3028_v39 = vmax.f32 %v3020_v33, -100.0  ;;  %v3041_v13 = vcombine.low %v3010_v19, %v3011_v10  ;;  %v3101_v15 = vcombine.low %v3026_v2, %v3027_v5 }
 0x57d   : > { %v3013_v6 = vmax.f32 %v2989_v62, -100.0  ;;  %v3029_v57 = vmax.f32 %v3021_v9, -100.0  ;;  %4023 = vpow2.f32 %v2992_v61  ;;  %v3002_v0 = vmul.f32 1.442695, %v2988_v35 }
 0x57e   : > { %v3063_v60 = vrot.slane %v3041_v13, %v5342_v4  ;;  %v3123_v20 = vrot.slane %v3101_v15, %v5342_v4  ;;  %4025 = vpow2.f32 %v2996_v1  ;;  %v3004_v26 = vmul.f32 1.442695, %v2989_v62 }
 0x57f   : > { %v3042_v21 = vcombine.low %v3012_v8, %v3013_v6  ;;  %v3102_v23 = vcombine.low %v3028_v39, %v3029_v57  ;;  %4027 = vpow2.f32 %v2998_v40  ;;  %v3214_v51 = vunpack.c.0.s8 %v3213_v36 }
 0x580   : > { %4029 = vpow2.f32 %v3000_v24 }
 0x581   : > { %v3070_v49 = vrot.slane %v3042_v21, %v5342_v4  ;;  %v3130_v54 = vrot.slane %v3102_v23, %v5342_v4  ;;  %4031 = vpow2.f32 %v3002_v0 }
 0x582   : > { %4033 = vpow2.f32 %v3004_v26 }
 0x583   : > { %v3072_v55 = vcombine.low %v3063_v60, %v3070_v49  ;;  %v3132_v27 = vcombine.low %v3123_v20, %v3130_v54 }
 0x585   : > { %v3086_v28 = vrot.slane %v3072_v55, %v5342_v4  ;;  %v3146_v32 = vrot.slane %v3132_v27, %v5342_v4  ;;  %v4022_v45 = vpop.eup %4021  ;;  %v3217_v4 = vsub.s32 %v3214_v51, %v4579_v30 }
 0x587   : > { %v3087_v34 = vcombine.low %v3079_v58, %v3086_v28  ;;  %v3147_v37 = vcombine.low %v3139_v29, %v3146_v32  ;;  %v4024_v46 = vpop.eup %4023 }
 0x588   : > { %v4026_v50 = vpop.eup %4025 }
 0x589   : > { %v3089_v41 = vmul.f32 %v3087_v34, %v3030_v52  ;;  %v3149_v43 = vmul.f32 %v3147_v37, %v3090_v31  ;;  %v4028_v16 = vpop.eup %4027 }
 0x58a   : > { %v4030_v14 = vpop.eup %4029 }
 0x58b   : > { %v3150_v25 = vadd.f32 %v3149_v43, %v3089_v41  ;;  %v4032_v3 = vpop.eup %4031 }
 0x58c   : > { %v4034_v30 = vpop.eup %4033 }
 0x58d   : > { %v3151_v53 = vsub.f32 0.0, %v3150_v25 }
 0x58f   : > { %v3156_v56 = vrot.slane %v3151_v53, %v4600_v42  ;;  %v3160_v38 = vrot.slane %v3151_v53, %v4583_v47  ;;  %v3164_v19 = vrot.slane %v3151_v53, %v4603_v63  ;;  %v3168_v2 = vrot.slane %v3151_v53, %v4595_v59 }
 0x590   : > { %v3172_v35 = vrot.slane %v3151_v53, %v4845_v17  ;;  %v3176_v33 = vrot.slane %v3151_v53, %v4820_v12  ;;  %v3180_v10 = vrot.slane %v3151_v53, %v4853_v18  ;;  %v3184_v5 = vrot.slane %v3151_v53, %v4832_v48 }
 0x591   : > { %v3194_v62 = vsel %vm3193_vm11, %v4020_v44, %v3156_v56  ;;  %v3195_v42 = vsel %vm3193_vm11, %v4024_v46, %v3160_v38  ;;  %v3196_v47 = vsel %vm3193_vm11, %v4022_v45, %v3164_v19  ;;  %v3197_v63 = vsel %vm3193_vm11, %v4026_v50, %v3168_v2 }
 0x592   : > { %v3198_v59 = vsel %vm3193_vm11, %v4028_v16, %v3172_v35  ;;  %v3199_v17 = vsel %vm3193_vm11, %v4030_v14, %v3176_v33  ;;  %v3200_v12 = vsel %vm3193_vm11, %v4032_v3, %v3180_v10  ;;  %v3201_v9 = vsel %vm3193_vm11, %v4034_v30, %v3184_v5 }
 0x593   : > { %v3210_v18 = vcombine.low %v3194_v62, %v3195_v42  ;;  %v3211_v8 = vcombine.low %v3196_v47, %v3197_v63  ;;  %v3227_v48 = vcombine.low %v3198_v59, %v3199_v17  ;;  %v3228_v39 = vcombine.low %v3200_v12, %v3201_v9 }
 0x595   : > { %v3218_v11 = vrot.slane %v3210_v18, %v3217_v4  ;;  %v3225_v13 = vrot.slane %v3211_v8, %v3217_v4  ;;  %v3235_v15 = vrot.slane %v3227_v48, %v3217_v4  ;;  %v3242_v6 = vrot.slane %v3228_v39, %v3217_v4 }
 0x597   : > { %v3226_v7 = vcombine.low %v3218_v11, %v3225_v13  ;;  %v3243_v57 = vcombine.low %v3235_v15, %v3242_v6 }
 0x599   : > { %3246 = vst [vmem:[%s303_s13] sm:$0xff] %v3226_v7  ;;  %3247 = vst [vmem:[%s303_s13 + $0x8] sm:$0xff] %v3243_v57 }
 0x59a   : > { %4166 = shalt.err (!%p4163_p11)
}
 0x59b   : > { %s4167_s1 = scalar_lea.hbm %s5404_s17, 256  ;;  %s4171_s21 = scalar_lea.hbm %s5452_s4, 512 }
 0x59c   : > { %p4168_p10 = scmp.ne.s32.totalorder %s5404_s17, %s4167_s1  ;;  %p4172_p8 = scmp.lt.u32.totalorder %s5404_s17, %s5452_s4 }
 0x59d   : > { %p4173_p2 = scmp.lt.u32.totalorder %s4171_s21, %s4167_s1  ;;  %p4175_p4 = scmp.lt.u32.totalorder %s4167_s1, %s5404_s17 }
 0x59e   : > { %p4169_p13 = pnand %p4168_p10, %p5565_p9 }
 0x59f   : > { %p4174_p1 = por %p4173_p2, %p4172_p8 }
 0x5a0   : > { %p4170_p0 = pneg %p4169_p13 }
 0x5a1   : > { %p4176_p12 = por %p4175_p4, %p4174_p1 }
 0x5a3   : > { %p4177_p6 = pnand %p4176_p12, %p4170_p0 }
 0x5a5   : > { %4180 = shalt.err (!%p4177_p6)
}
 0x5a6   : > { %3918 = dma.vmem_to_hbm [thread:$0]  (%p5565_p9), %s5406_s25, 256, %s5404_s17, %s3249_s29  }
 0x5a7 PF: > { %s5566_s8 = sld [smem:[#allocation18_spill]]  ;;  %s3275_s9 = sand.u32 1, %s4215_s15  }
 0x5a8   : > { %p5568_p5 = scmp.ge.s32.totalorder %s4227_s18, 2  ;;  %s3276_s20 = scalar_lea.sflag [#allocation4], %s3275_s9 }
 0x5ad   : > { %p5567_p3 = scmp.ne.s32.totalorder %s5566_s8, 0 }
 0x5af   : > { %p3935_p7 = pnand %p5568_p5, %p5567_p3 }
 0x5b1   : > { %4210 = dma.done.wait (!%p3935_p7), %s3276_s20, 256  }
 0x5b2   : > { %4212 = vsyncadd (!%p3935_p7), %s3276_s20, 4294967040  ;;  %s5569_s18 = sld [smem:[#allocation16_spill]]  ;;  %s5570_s14 = sld [smem:[#allocation15_spill]] }
 0x5b3   : > { %s5571_s17 = sld [smem:[#allocation17_spill]]  ;;  %s5572_s15 = smov %s4219_s16 }
 0x5b8   : > { %p21_p11 = scmp.ge.s32.totalorder %s5569_s18, 4   ;;  %s5573_s16 = smov %s5570_s14 }
 0x5ba   :  { %23 = sbr.rel (!%p21_p11) target bundleno = 10 (0xa), region = 111 }
 0x5c1   :  { %3281 = vsyncpa [#allocation3], 1 }
 0x5c2   :  { %3283 = vsyncpa [#allocation3 + $0x1], 1 }
 0x5c3   :  { %3284 = vsyncpa [#allocation6], 1 }
 0x5c4   :  { %3286 = vsyncpa [#allocation6 + $0x1], 1 }
 0x5c5   :  { %3287 = vsyncpa [#allocation9], 1 }
 0x5c6   :  { %3288 = vsyncpa [#allocation4], 1 }
 0x5c7   :  { %3290 = vsyncpa [#allocation4 + $0x1], 1 }

</bundles_post_ra>
